<compile_context>
chip_gen: v6e
topology: v6e:2x2x1
jax: 0.10.0
libtpu: 0.0.40
codegen_flags: <defaults>
</compile_context>

<pallas_src>
import math
import functools

import jax
import jax.numpy as jnp
from jax.experimental import pallas as pl
from jax.experimental.pallas import tpu as pltpu

_GN_EPS = 1e-5        # nn.GroupNorm default eps
_BN_EPS = 1e-3        # ultralytics Conv BatchNorm2d eps
_SQRT_2_OVER_PI = 0.7978845608028654


# ----------------------------------------------------------------------------
# in-kernel math helpers
# ----------------------------------------------------------------------------
def _silu(v):
    # v * sigmoid(v) == v / (1 + exp(-v)): one EUP exp + one divide, exact.
    return v / (1.0 + jnp.exp(-v))


def _gelu_tanh(v):
    # tanh-approximate GELU (torch nn.GELU uses erf; difference < ~1e-3).
    return 0.5 * v * (1.0 + jnp.tanh(_SQRT_2_OVER_PI * (v + 0.044715 * v * v * v)))


def _mean_all(v, inv_count):
    # (C, HW) -> (1, 1): lane reduce first, then sublane reduce (both XLU slots).
    return jnp.sum(jnp.sum(v, axis=1, keepdims=True), axis=0, keepdims=True) * inv_count


# ----------------------------------------------------------------------------
# the fused kernel: one grid step == b_tile full samples (C, HW) resident in VMEM
# ----------------------------------------------------------------------------
def _lightmlp_kernel(x_ref, vec_ref, bfc1_ref, wpc_ref, w1_ref, w2_ref, o_ref,
                     *, b_tile, hw_tile, inv_count, eps):
    # ---- hoisted constants, read once per grid step --------------------------
    a1 = vec_ref[:, 0:1]      # (C,1) norm1 gamma * dwconv weight * dw-BN scale
    b1 = vec_ref[:, 1:2]      # (C,1) matching folded bias
    bpc = vec_ref[:, 2:3]     # (C,1) pwconv BN bias (BN scale folded into wpc)
    ls1 = vec_ref[:, 3:4]     # (C,1) layer_scale_1
    bfc2 = vec_ref[:, 4:5]    # (C,1) layer_scale_2 * fc2 bias
    bfc1 = bfc1_ref[...]      # (CH,1) fc1 bias with norm2 beta folded in
    wpc = wpc_ref[...]        # (C,C)  bf16, pwconv weight, BN scale folded
    w1 = w1_ref[...]          # (CH,C) bf16, fc1 weight, norm2 gamma folded
    w2 = w2_ref[...]          # (C,CH) bf16, fc2 weight, layer_scale_2 folded

    hw = x_ref.shape[2]
    n_chunks = hw // hw_tile

    for b in range(b_tile):                       # static unroll over packed samples
        x = x_ref[b].astype(jnp.float32)          # (C, HW), last dim is lane-dense

        # ---- branch 1: GN1 -> dw 1x1 (+BN+SiLU) -> pw 1x1 (+BN+SiLU) ---------
        mu = _mean_all(x, inv_count)
        xc = x - mu
        var = _mean_all(xc * xc, inv_count)       # two-pass variance, always >= 0
        xh = xc * jax.lax.rsqrt(var + eps)
        z = _silu(xh * a1 + b1)
        u = _silu(jnp.dot(wpc, z.astype(jnp.bfloat16),
                          preferred_element_type=jnp.float32) + bpc)
        x1 = x + ls1 * u

        # ---- branch 2: GN2 -> fc1 -> GELU -> fc2, tiled over HW --------------
        mu2 = _mean_all(x1, inv_count)
        xc2 = x1 - mu2
        var2 = _mean_all(xc2 * xc2, inv_count)
        rstd2 = jax.lax.rsqrt(var2 + eps)

        for ci in range(n_chunks):                # static tiles: GELU intermediate
            c0 = ci * hw_tile                     # stays at (4C, hw_tile)
            xh2 = (xc2[:, c0:c0 + hw_tile] * rstd2).astype(jnp.bfloat16)
            h = _gelu_tanh(jnp.dot(w1, xh2, preferred_element_type=jnp.float32)
                           + bfc1)
            m = jnp.dot(w2, h.astype(jnp.bfloat16),
                        preferred_element_type=jnp.float32) + bfc2
            o_ref[b, :, c0:c0 + hw_tile] = (
                x1[:, c0:c0 + hw_tile] + m).astype(o_ref.dtype)


# ----------------------------------------------------------------------------
# tiling heuristics
# ----------------------------------------------------------------------------
def _pick_btile(n, c, hw, itemsize, target_bytes=1 << 20, max_bytes=4 << 20):
    """Largest divisor of n giving a >= ~1 MiB x-block while keeping >= 2 grid steps."""
    best = 1
    for d in range(1, n + 1):
        if n % d:
            continue
        if n >= 2 and n // d < 2:     # keep >= 2 grid steps so both v7x TCs get work
            continue
        blk = d * c * hw * itemsize
        if blk > max_bytes:
            continue
        best = d
        if blk >= target_bytes:
            break
    return best


def _pick_hw_tile(hw, max_tile=1024):
    """Largest multiple-of-128 divisor of hw that is <= max_tile (whole hw if small)."""
    if hw <= max_tile:
        return hw
    t = max_tile - (max_tile % 128)
    while t >= 128:
        if hw % t == 0:
            return t
        t -= 128
    return hw


# ----------------------------------------------------------------------------
# public wrapper: NCHW in / NCHW out (PyTorch convention), no transposes
# ----------------------------------------------------------------------------
def lightmlp_block(x_nchw, params):
    n, c, h, w = x_nchw.shape
    hw = h * w
    ch = params["w1"].shape[0]
    x = x_nchw.reshape(n, c, hw)                  # free reshape, stays channel-major

    b_tile = _pick_btile(n, c, hw, x.dtype.itemsize)
    hw_tile = _pick_hw_tile(hw)

    kernel = functools.partial(_lightmlp_kernel, b_tile=b_tile, hw_tile=hw_tile,
                               inv_count=1.0 / float(hw * c), eps=_GN_EPS)
    cost = pl.CostEstimate(
        flops=2 * n * hw * (c * c + 2 * c * ch),
        transcendentals=n * hw * (2 * c + ch),
        bytes_accessed=(2 * n * hw * c * x.dtype.itemsize          # x in + out
                        + 2 * (c * c + 2 * c * ch)                 # bf16 weights
                        + 4 * (8 * c + ch)),                       # f32 vectors
    )
    const = dict(pipeline_mode=pl.Buffered(1))    # constant blocks: single-buffered

    out = pl.pallas_call(
        kernel,
        out_shape=jax.ShapeDtypeStruct((n, c, hw), x.dtype),
        grid=(n // b_tile,),
        in_specs=[
            pl.BlockSpec((b_tile, c, hw), lambda i: (i, 0, 0)),    # x samples
            pl.BlockSpec((c, 8), lambda i: (0, 0), **const),       # packed channel vecs
            pl.BlockSpec((ch, 1), lambda i: (0, 0), **const),      # fc1 bias (folded)
            pl.BlockSpec((c, c), lambda i: (0, 0), **const),       # pwconv weight bf16
            pl.BlockSpec((ch, c), lambda i: (0, 0), **const),      # fc1 weight bf16
            pl.BlockSpec((c, ch), lambda i: (0, 0), **const),      # fc2 weight bf16
        ],
        out_specs=pl.BlockSpec((b_tile, c, hw), lambda i: (i, 0, 0)),
        compiler_params=pltpu.CompilerParams(
            dimension_semantics=("parallel",),
            vmem_limit_bytes=64 * 1024 * 1024),
        cost_estimate=cost,
    )(x, params["vec"], params["bfc1"], params["wpc"], params["w1"], params["w2"])
    return out.reshape(n, c, h, w)


# ----------------------------------------------------------------------------
# parameter construction (eval-mode BN folded, affines / layer scales folded)
# ----------------------------------------------------------------------------
def _bn_fold(key, c, eps=_BN_EPS):
    k1, k2, k3, k4 = jax.random.split(key, 4)
    gamma = 1.0 + 0.1 * jax.random.normal(k1, (c,), jnp.float32)
    beta = 0.1 * jax.random.normal(k2, (c,), jnp.float32)
    mean = 0.1 * jax.random.normal(k3, (c,), jnp.float32)
    var = 1.0 + 0.1 * jnp.abs(jax.random.normal(k4, (c,), jnp.float32))
    scale = gamma / jnp.sqrt(var + eps)
    bias = beta - mean * scale
    return scale, bias


def init_lightmlp_block(key, c, mlp_ratio=4.0, layer_scale_init_value=1e-5):
    ch = int(c * mlp_ratio)
    ks = jax.random.split(key, 12)

    # GroupNorm(1, C) affines for norm1 / norm2
    g1 = 1.0 + 0.1 * jax.random.normal(ks[0], (c,), jnp.float32)
    b1 = 0.1 * jax.random.normal(ks[1], (c,), jnp.float32)
    g2 = 1.0 + 0.1 * jax.random.normal(ks[2], (c,), jnp.float32)
    b2 = 0.1 * jax.random.normal(ks[3], (c,), jnp.float32)

    # dw.dconv: depthwise 1x1 conv (per-channel scalar, no bias) + BN + SiLU
    w_dc = jax.random.normal(ks[4], (c,), jnp.float32)
    s_dc, t_dc = _bn_fold(ks[5], c)

    # dw.pconv: 1x1 conv (no bias, torch (out,in) layout) + BN + SiLU
    w_pc = jax.random.normal(ks[6], (c, c), jnp.float32) / math.sqrt(c)
    s_pc, t_pc = _bn_fold(ks[7], c)

    # mlp.fc1 / fc2: 1x1 convs with bias, torch (out,in) layout
    w1 = 0.02 * jax.random.normal(ks[8], (ch, c), jnp.float32)
    bfc1 = 0.05 * jax.random.normal(ks[9], (ch,), jnp.float32)
    w2 = 0.02 * jax.random.normal(ks[10], (c, ch), jnp.float32)
    bfc2 = 0.05 * jax.random.normal(ks[11], (c,), jnp.float32)

    ls1 = layer_scale_init_value * jnp.ones((c,), jnp.float32)
    ls2 = layer_scale_init_value * jnp.ones((c,), jnp.float32)

    # --- folds: BN scales into weights, norm2 affine into fc1, ls2 into fc2 ---
    a_dw = w_dc * s_dc
    a1_f = g1 * a_dw
    b1_f = b1 * a_dw + t_dc
    wpc_f = s_pc[:, None] * w_pc                  # (C_out, C_in)
    w1_f = w1 * g2[None, :]                       # (CH, C)
    bfc1_f = bfc1 + w1 @ b2                       # (CH,)
    w2_f = ls2[:, None] * w2                      # (C, CH)
    bfc2_f = ls2 * bfc2

    vec = jnp.zeros((c, 8), jnp.float32)
    vec = (vec.at[:, 0].set(a1_f).at[:, 1].set(b1_f).at[:, 2].set(t_pc)
              .at[:, 3].set(ls1).at[:, 4].set(bfc2_f))

    return {
        "vec": vec,
        "bfc1": bfc1_f.reshape(ch, 1).astype(jnp.float32),
        "wpc": wpc_f.astype(jnp.bfloat16),
        "w1": w1_f.astype(jnp.bfloat16),
        "w2": w2_f.astype(jnp.bfloat16),
        # raw params kept only for the plain-JAX reference check
        "_raw": dict(g1=g1, b1=b1, g2=g2, b2=b2, w_dc=w_dc, s_dc=s_dc, t_dc=t_dc,
                     w_pc=w_pc, s_pc=s_pc, t_pc=t_pc, w1=w1, bfc1=bfc1, w2=w2,
                     bfc2=bfc2, ls1=ls1, ls2=ls2),
    }


# ----------------------------------------------------------------------------
# plain-JAX reference (NCHW, mirrors the PyTorch forward)
# ----------------------------------------------------------------------------
def lightmlp_block_ref(x, p):
    r = p["_raw"]

    def gn(v, g, b):
        mu = jnp.mean(v, axis=(1, 2, 3), keepdims=True)
        var = jnp.mean((v - mu) ** 2, axis=(1, 2, 3), keepdims=True)
        return (v - mu) / jnp.sqrt(var + _GN_EPS) * g[None, :, None, None] \
            + b[None, :, None, None]

    cvec = lambda v: v[None, :, None, None]
    silu = lambda v: v * jax.nn.sigmoid(v)
    gelu = lambda v: 0.5 * v * (1.0 + jnp.tanh(
        _SQRT_2_OVER_PI * (v + 0.044715 * v ** 3)))

    y = gn(x, r["g1"], r["b1"])
    y = silu(y * cvec(r["w_dc"] * r["s_dc"]) + cvec(r["t_dc"]))
    u = jnp.einsum("nihw,oi->nohw", y, r["w_pc"])
    u = silu(u * cvec(r["s_pc"]) + cvec(r["t_pc"]))
    x1 = x + cvec(r["ls1"]) * u

    y2 = gn(x1, r["g2"], r["b2"])
    h = gelu(jnp.einsum("nchw,dc->ndhw", y2, r["w1"]) + cvec(r["bfc1"]))
    m = jnp.einsum("ndhw,cd->nchw", h, r["w2"]) + cvec(r["bfc2"])
    return x1 + cvec(r["ls2"]) * m


# ----------------------------------------------------------------------------
if __name__ == "__main__":
    key = jax.random.PRNGKey(0)
    kx, kp = jax.random.split(key)

    # NCHW input, PyTorch convention: B=2, C=32 (= in_channels = out_channels),
    # H=W=16 (HW=256, lane-dense last dim), mlp hidden = 4*C = 128.
    N, C, H, W = 2, 32, 16, 16
    x = jax.random.normal(kx, (N, C, H, W), jnp.float32)
    params = init_lightmlp_block(kp, C, mlp_ratio=4.0, layer_scale_init_value=0.1)

    y = lightmlp_block(x, params)
    jax.block_until_ready(y)
    assert y.shape == (N, C, H, W), y.shape

    y_ref = lightmlp_block_ref(x, params)
    err = float(jnp.max(jnp.abs(y - y_ref)))
    assert err < 2e-2, f"max abs err {err}"

    print("KERNEL_OK")
</pallas_src>

<mosaic_0001>
module attributes {stable_mosaic.version = 11 : i64} {
  func.func @_lightmlp_kernel(%arg0: i32, %arg1: memref<1x32x256xf32, #tpu.memory_space<vmem>>, %arg2: memref<32x8xf32, #tpu.memory_space<vmem>>, %arg3: memref<128x1xf32, #tpu.memory_space<vmem>>, %arg4: memref<32x32xbf16, #tpu.memory_space<vmem>>, %arg5: memref<128x32xbf16, #tpu.memory_space<vmem>>, %arg6: memref<32x128xbf16, #tpu.memory_space<vmem>>, %arg7: memref<1x32x256xf32, #tpu.memory_space<vmem>>) attributes {dimension_semantics = [#tpu.dimension_semantics<parallel>], iteration_bounds = array<i64: 2>, scalar_prefetch = 0 : i64, scratch_operands = 0 : i64, tpu.core_type = #tpu.core_type<tc>, window_params = [{transform_indices = @transform_0, window_bounds = array<i64: 1, 32, 256>}, {pipeline_mode = #tpu.pipeline_mode<synchronous>, transform_indices = @transform_1, window_bounds = array<i64: 32, 8>}, {pipeline_mode = #tpu.pipeline_mode<synchronous>, transform_indices = @transform_2, window_bounds = array<i64: 128, 1>}, {pipeline_mode = #tpu.pipeline_mode<synchronous>, transform_indices = @transform_3, window_bounds = array<i64: 32, 32>}, {pipeline_mode = #tpu.pipeline_mode<synchronous>, transform_indices = @transform_4, window_bounds = array<i64: 128, 32>}, {pipeline_mode = #tpu.pipeline_mode<synchronous>, transform_indices = @transform_5, window_bounds = array<i64: 32, 128>}, {transform_indices = @transform_6, window_bounds = array<i64: 1, 32, 256>}]} {
    %c0 = arith.constant 0 : index
    %c0_0 = arith.constant 0 : index
    %0 = vector.load %arg2[%c0, %c0_0] : memref<32x8xf32, #tpu.memory_space<vmem>>, vector<32x1xf32>
    %c0_1 = arith.constant 0 : index
    %c1 = arith.constant 1 : index
    %1 = vector.load %arg2[%c0_1, %c1] : memref<32x8xf32, #tpu.memory_space<vmem>>, vector<32x1xf32>
    %c0_2 = arith.constant 0 : index
    %c2 = arith.constant 2 : index
    %2 = vector.load %arg2[%c0_2, %c2] : memref<32x8xf32, #tpu.memory_space<vmem>>, vector<32x1xf32>
    %c0_3 = arith.constant 0 : index
    %c3 = arith.constant 3 : index
    %3 = vector.load %arg2[%c0_3, %c3] : memref<32x8xf32, #tpu.memory_space<vmem>>, vector<32x1xf32>
    %c0_4 = arith.constant 0 : index
    %c4 = arith.constant 4 : index
    %4 = vector.load %arg2[%c0_4, %c4] : memref<32x8xf32, #tpu.memory_space<vmem>>, vector<32x1xf32>
    %c0_5 = arith.constant 0 : index
    %c0_6 = arith.constant 0 : index
    %5 = vector.load %arg3[%c0_5, %c0_6] : memref<128x1xf32, #tpu.memory_space<vmem>>, vector<128x1xf32>
    %c0_7 = arith.constant 0 : index
    %c0_8 = arith.constant 0 : index
    %6 = vector.load %arg4[%c0_7, %c0_8] : memref<32x32xbf16, #tpu.memory_space<vmem>>, vector<32x32xbf16>
    %c0_9 = arith.constant 0 : index
    %c0_10 = arith.constant 0 : index
    %7 = vector.load %arg5[%c0_9, %c0_10] : memref<128x32xbf16, #tpu.memory_space<vmem>>, vector<128x32xbf16>
    %c0_11 = arith.constant 0 : index
    %c0_12 = arith.constant 0 : index
    %8 = vector.load %arg6[%c0_11, %c0_12] : memref<32x128xbf16, #tpu.memory_space<vmem>>, vector<32x128xbf16>
    %c0_13 = arith.constant 0 : index
    %c0_14 = arith.constant 0 : index
    %c0_15 = arith.constant 0 : index
    %9 = vector.load %arg1[%c0_13, %c0_14, %c0_15] : memref<1x32x256xf32, #tpu.memory_space<vmem>>, vector<1x32x256xf32>
    %10 = vector.shape_cast %9 : vector<1x32x256xf32> to vector<32x256xf32>
    %cst = arith.constant dense<0.000000e+00> : vector<32xf32>
    %11 = vector.multi_reduction <add>, %10, %cst [1] : vector<32x256xf32> to vector<32xf32>
    %12 = vector.shape_cast %11 : vector<32xf32> to vector<32x1xf32>
    %cst_16 = arith.constant dense<0.000000e+00> : vector<1xf32>
    %13 = vector.multi_reduction <add>, %12, %cst_16 [0] : vector<32x1xf32> to vector<1xf32>
    %14 = vector.shape_cast %13 : vector<1xf32> to vector<1x1xf32>
    %cst_17 = arith.constant 1.22070313E-4 : f32
    %15 = vector.broadcast %cst_17 : f32 to vector<1x1xf32>
    %16 = arith.mulf %14, %15 : vector<1x1xf32>
    %17 = vector.broadcast %16 : vector<1x1xf32> to vector<32x256xf32>
    %18 = arith.subf %10, %17 : vector<32x256xf32>
    %19 = arith.mulf %18, %18 : vector<32x256xf32>
    %cst_18 = arith.constant dense<0.000000e+00> : vector<32xf32>
    %20 = vector.multi_reduction <add>, %19, %cst_18 [1] : vector<32x256xf32> to vector<32xf32>
    %21 = vector.shape_cast %20 : vector<32xf32> to vector<32x1xf32>
    %cst_19 = arith.constant dense<0.000000e+00> : vector<1xf32>
    %22 = vector.multi_reduction <add>, %21, %cst_19 [0] : vector<32x1xf32> to vector<1xf32>
    %23 = vector.shape_cast %22 : vector<1xf32> to vector<1x1xf32>
    %cst_20 = arith.constant 1.22070313E-4 : f32
    %24 = vector.broadcast %cst_20 : f32 to vector<1x1xf32>
    %25 = arith.mulf %23, %24 : vector<1x1xf32>
    %cst_21 = arith.constant 9.99999974E-6 : f32
    %26 = vector.broadcast %cst_21 : f32 to vector<1x1xf32>
    %27 = arith.addf %25, %26 : vector<1x1xf32>
    %28 = math.rsqrt %27 : vector<1x1xf32>
    %29 = vector.broadcast %28 : vector<1x1xf32> to vector<32x256xf32>
    %30 = arith.mulf %18, %29 : vector<32x256xf32>
    %31 = vector.broadcast %0 : vector<32x1xf32> to vector<32x256xf32>
    %32 = arith.mulf %30, %31 : vector<32x256xf32>
    %33 = vector.broadcast %1 : vector<32x1xf32> to vector<32x256xf32>
    %34 = arith.addf %32, %33 : vector<32x256xf32>
    %cst_22 = arith.constant 0.000000e+00 : f32
    %35 = vector.broadcast %cst_22 : f32 to vector<32x256xf32>
    %36 = arith.subf %35, %34 : vector<32x256xf32>
    %37 = math.exp %36 : vector<32x256xf32>
    %cst_23 = arith.constant 1.000000e+00 : f32
    %38 = vector.broadcast %cst_23 : f32 to vector<32x256xf32>
    %39 = arith.addf %38, %37 : vector<32x256xf32>
    %40 = arith.divf %34, %39 : vector<32x256xf32>
    %41 = arith.truncf %40 : vector<32x256xf32> to vector<32x256xbf16>
    %cst_24 = arith.constant dense<0.000000e+00> : vector<32x256xf32>
    %42 = tpu.matmul %6, %41, %cst_24 {dimension_numbers = #tpu.dot_dimension_numbers<[1], [0], [0], [1], [0, 0, 1, 1], [], []>} : vector<32x32xbf16>, vector<32x256xbf16>, vector<32x256xf32> -> vector<32x256xf32>
    %43 = vector.broadcast %2 : vector<32x1xf32> to vector<32x256xf32>
    %44 = arith.addf %42, %43 : vector<32x256xf32>
    %cst_25 = arith.constant 0.000000e+00 : f32
    %45 = vector.broadcast %cst_25 : f32 to vector<32x256xf32>
    %46 = arith.subf %45, %44 : vector<32x256xf32>
    %47 = math.exp %46 : vector<32x256xf32>
    %cst_26 = arith.constant 1.000000e+00 : f32
    %48 = vector.broadcast %cst_26 : f32 to vector<32x256xf32>
    %49 = arith.addf %48, %47 : vector<32x256xf32>
    %50 = arith.divf %44, %49 : vector<32x256xf32>
    %51 = vector.broadcast %3 : vector<32x1xf32> to vector<32x256xf32>
    %52 = arith.mulf %51, %50 : vector<32x256xf32>
    %53 = arith.addf %10, %52 : vector<32x256xf32>
    %cst_27 = arith.constant dense<0.000000e+00> : vector<32xf32>
    %54 = vector.multi_reduction <add>, %53, %cst_27 [1] : vector<32x256xf32> to vector<32xf32>
    %55 = vector.shape_cast %54 : vector<32xf32> to vector<32x1xf32>
    %cst_28 = arith.constant dense<0.000000e+00> : vector<1xf32>
    %56 = vector.multi_reduction <add>, %55, %cst_28 [0] : vector<32x1xf32> to vector<1xf32>
    %57 = vector.shape_cast %56 : vector<1xf32> to vector<1x1xf32>
    %cst_29 = arith.constant 1.22070313E-4 : f32
    %58 = vector.broadcast %cst_29 : f32 to vector<1x1xf32>
    %59 = arith.mulf %57, %58 : vector<1x1xf32>
    %60 = vector.broadcast %59 : vector<1x1xf32> to vector<32x256xf32>
    %61 = arith.subf %53, %60 : vector<32x256xf32>
    %62 = arith.mulf %61, %61 : vector<32x256xf32>
    %cst_30 = arith.constant dense<0.000000e+00> : vector<32xf32>
    %63 = vector.multi_reduction <add>, %62, %cst_30 [1] : vector<32x256xf32> to vector<32xf32>
    %64 = vector.shape_cast %63 : vector<32xf32> to vector<32x1xf32>
    %cst_31 = arith.constant dense<0.000000e+00> : vector<1xf32>
    %65 = vector.multi_reduction <add>, %64, %cst_31 [0] : vector<32x1xf32> to vector<1xf32>
    %66 = vector.shape_cast %65 : vector<1xf32> to vector<1x1xf32>
    %cst_32 = arith.constant 1.22070313E-4 : f32
    %67 = vector.broadcast %cst_32 : f32 to vector<1x1xf32>
    %68 = arith.mulf %66, %67 : vector<1x1xf32>
    %cst_33 = arith.constant 9.99999974E-6 : f32
    %69 = vector.broadcast %cst_33 : f32 to vector<1x1xf32>
    %70 = arith.addf %68, %69 : vector<1x1xf32>
    %71 = math.rsqrt %70 : vector<1x1xf32>
    %72 = vector.broadcast %71 : vector<1x1xf32> to vector<32x256xf32>
    %73 = arith.mulf %61, %72 : vector<32x256xf32>
    %74 = arith.truncf %73 : vector<32x256xf32> to vector<32x256xbf16>
    %cst_34 = arith.constant dense<0.000000e+00> : vector<128x256xf32>
    %75 = tpu.matmul %7, %74, %cst_34 {dimension_numbers = #tpu.dot_dimension_numbers<[1], [0], [0], [1], [0, 0, 1, 1], [], []>} : vector<128x32xbf16>, vector<32x256xbf16>, vector<128x256xf32> -> vector<128x256xf32>
    %76 = vector.broadcast %5 : vector<128x1xf32> to vector<128x256xf32>
    %77 = arith.addf %75, %76 : vector<128x256xf32>
    %cst_35 = arith.constant 5.000000e-01 : f32
    %78 = vector.broadcast %cst_35 : f32 to vector<128x256xf32>
    %79 = arith.mulf %78, %77 : vector<128x256xf32>
    %cst_36 = arith.constant 4.471500e-02 : f32
    %80 = vector.broadcast %cst_36 : f32 to vector<128x256xf32>
    %81 = arith.mulf %80, %77 : vector<128x256xf32>
    %82 = arith.mulf %81, %77 : vector<128x256xf32>
    %83 = arith.mulf %82, %77 : vector<128x256xf32>
    %84 = arith.addf %77, %83 : vector<128x256xf32>
    %cst_37 = arith.constant 0.797884583 : f32
    %85 = vector.broadcast %cst_37 : f32 to vector<128x256xf32>
    %86 = arith.mulf %85, %84 : vector<128x256xf32>
    %87 = math.tanh %86 : vector<128x256xf32>
    %cst_38 = arith.constant 1.000000e+00 : f32
    %88 = vector.broadcast %cst_38 : f32 to vector<128x256xf32>
    %89 = arith.addf %88, %87 : vector<128x256xf32>
    %90 = arith.mulf %79, %89 : vector<128x256xf32>
    %91 = arith.truncf %90 : vector<128x256xf32> to vector<128x256xbf16>
    %cst_39 = arith.constant dense<0.000000e+00> : vector<32x256xf32>
    %92 = tpu.matmul %8, %91, %cst_39 {dimension_numbers = #tpu.dot_dimension_numbers<[1], [0], [0], [1], [0, 0, 1, 1], [], []>} : vector<32x128xbf16>, vector<128x256xbf16>, vector<32x256xf32> -> vector<32x256xf32>
    %93 = vector.broadcast %4 : vector<32x1xf32> to vector<32x256xf32>
    %94 = arith.addf %92, %93 : vector<32x256xf32>
    %95 = arith.addf %53, %94 : vector<32x256xf32>
    %c0_40 = arith.constant 0 : index
    %c0_41 = arith.constant 0 : index
    %c0_42 = arith.constant 0 : index
    %96 = vector.load %arg7[%c0_40, %c0_41, %c0_42] : memref<1x32x256xf32, #tpu.memory_space<vmem>>, vector<1x32x256xf32>
    %97 = vector.shape_cast %96 : vector<1x32x256xf32> to vector<32x256xf32>
    %98 = vector.shape_cast %95 : vector<32x256xf32> to vector<1x32x256xf32>
    tpu.vector_store %arg7[%c0_40, %c0_41, %c0_42], %98 {strides = array<i32>} : memref<1x32x256xf32, #tpu.memory_space<vmem>>, vector<1x32x256xf32>,
    return
  }
  func.func @transform_0(%arg0: i32) -> (i32, i32, i32) {
    %c0_i32 = arith.constant 0 : i32
    %c0_i32_0 = arith.constant 0 : i32
    %c0_i32_1 = arith.constant 0 : i32
    return %arg0, %c0_i32, %c0_i32_0 : i32, i32, i32
  }
  func.func @transform_1(%arg0: i32) -> (i32, i32) {
    %c0_i32 = arith.constant 0 : i32
    %c0_i32_0 = arith.constant 0 : i32
    %c0_i32_1 = arith.constant 0 : i32
    return %c0_i32, %c0_i32_0 : i32, i32
  }
  func.func @transform_2(%arg0: i32) -> (i32, i32) {
    %c0_i32 = arith.constant 0 : i32
    %c0_i32_0 = arith.constant 0 : i32
    %c0_i32_1 = arith.constant 0 : i32
    return %c0_i32, %c0_i32_0 : i32, i32
  }
  func.func @transform_3(%arg0: i32) -> (i32, i32) {
    %c0_i32 = arith.constant 0 : i32
    %c0_i32_0 = arith.constant 0 : i32
    %c0_i32_1 = arith.constant 0 : i32
    return %c0_i32, %c0_i32_0 : i32, i32
  }
  func.func @transform_4(%arg0: i32) -> (i32, i32) {
    %c0_i32 = arith.constant 0 : i32
    %c0_i32_0 = arith.constant 0 : i32
    %c0_i32_1 = arith.constant 0 : i32
    return %c0_i32, %c0_i32_0 : i32, i32
  }
  func.func @transform_5(%arg0: i32) -> (i32, i32) {
    %c0_i32 = arith.constant 0 : i32
    %c0_i32_0 = arith.constant 0 : i32
    %c0_i32_1 = arith.constant 0 : i32
    return %c0_i32, %c0_i32_0 : i32, i32
  }
  func.func @transform_6(%arg0: i32) -> (i32, i32, i32) {
    %c0_i32 = arith.constant 0 : i32
    %c0_i32_0 = arith.constant 0 : i32
    %c0_i32_1 = arith.constant 0 : i32
    return %arg0, %c0_i32, %c0_i32_0 : i32, i32, i32
  }
}

</mosaic_0001>

<bundles_post_ra>
// kernel: tpu_custom_call.1
= control target key start
LH: loop header
LB: loop body
LE: loop exit
PB: predicated region body
PF: predicated region fallthrough
CT: control target
= control target key end

     0   :  { %11 = vsyncpa [#allocation3], 0  ;;  %s2625_s0 = inlined_call_operand.vmem [shape: f32[2,32,256], index: 0, kind: input, shape index: {}]   ;;  %s2626_s1 = inlined_call_operand.vmem [shape: f32[32,8], index: 1, kind: input, shape index: {}]   ;;  %s2627_s2 = inlined_call_operand.vmem [shape: f32[128,1], index: 2, kind: input, shape index: {}]   ;;  %s2628_s3 = inlined_call_operand.vmem [shape: bf16[32,32], index: 3, kind: input, shape index: {}]   ;;  %s2629_s4 = inlined_call_operand.vmem [shape: bf16[128,32], index: 4, kind: input, shape index: {}]   ;;  %s2630_s5 = inlined_call_operand.vmem [shape: bf16[32,128], index: 5, kind: input, shape index: {}]   ;;  %s2631_s6 = inlined_call_operand.hbm [shape: f32[2,32,256], index: 6, kind: output, shape index: {}]  }
   0x1   :  { %13 = vsyncpa [#allocation3 + $0x1], 0  ;;  %s1795_s21 = smov 0   ;;  %s1797_s22 = smov 0  }
   0x2   :  { %s1799_s23 = smov 0   ;;  %s1801_s24 = smov 0  }
   0x3 LB: > { %s1816_s25 = sadd.s32 4294967295, %s1750_s24   ;;  %s1451_s26 = sadd.s32 4294967294, %s1750_s24   ;;  %s1750_s24 = sphi %s1801_s24, %s2684_s24   ;;  %s1746_s23 = sphi %s1799_s23, %s2683_s23   ;;  %s1742_s22 = sphi %s1797_s22, %s2682_s22   ;;  %s1738_s21 = sphi %s1795_s21, %s2681_s21  }
   0x4   : > { %s1820_s27 = sadd.s32 1, %s1750_s24   ;;  %s157_s28 = sadd.s32 1, %s1746_s23 }
   0x5   : > { %s154_s29 = ssub.s32 %s1750_s24, %s1820_s27  ;;  %p167_p0 = scmp.ne.s32.totalorder %s1746_s23, %s1742_s22 }
   0x6   : > { %p155_p1 = scmp.eq.s32.totalorder %s154_s29, 0  ;;  %p168_p2 = scmp.eq.s32.totalorder %s1816_s25, 1 }
   0x7   : > { %p173_p3 = scmp.ne.s32.totalorder %s1742_s22, %s1738_s21  ;;  %p174_p4 = scmp.eq.s32.totalorder %s1451_s26, 1 }
   0x8   : > { %s1831_s30 = scalar_select %p155_p1, %s1746_s23, %s157_s28  }
   0x9   : > { %p1833_p5 = por %p168_p2, %p167_p0  ;;  %p1837_p6 = por %p174_p4, %p173_p3 }
   0xa   : > { %p1454_p7 = scmp.ge.s32.totalorder %s1750_s24, 1  ;;  %p215_p8 = scmp.lt.s32.totalorder %s1750_s24, 3 }
   0xc   : > { %p216_p9 = pnand %p1454_p7, %p215_p8 }
   0xe   : > { %219 = sbr.rel (%p216_p9) target bundleno = 1629 (0x65d), region = 44 }
  0x13   : > { %p245_p10 = scmp.lt.s32.totalorder %s1816_s25, 1  ;;  %v2632_v12 = vmov 0   ;;  %v1909_v42 = vld [vmem:[%s2626_s1 + $0x18] sm:$0xff]  ;;  %v1915_v43 = vld [vmem:[%s2626_s1 + $0x10] sm:$0xff]  ;;  %v1753_v44 = vmov 1   ;;  %v1926_v50 = vld [vmem:[%s2626_s1] sm:$0xff] }
  0x14   : > { %1534 = vset.pattern.permute.xlu1 %v2632_v12  ;;  %1533 = vset.pattern.permute.xlu0 %v2632_v12  ;;  %v1932_v51 = vld [vmem:[%s2626_s1 + $0x8] sm:$0xff]  ;;  %v1754_v52 = vmov 2   ;;  %v1755_v53 = vmov 3   ;;  %vm503_vm0 = vcmask 261120   ;;  %s242_s18 = sand.u32 1, %s1742_s22   ;;  %s1486_s26 = sshll.u32 %s1816_s25, 10 }
  0x15   : > { %s246_s9 = scalar_select %p245_p10, %s1816_s25, 1  ;;  %542 = vmatprep.mubr.bf16.mxu0 %v2632_v12  ;;  %893 = vmatprep.mubr.bf16.mxu1 %v2632_v12 }
  0x16   : > { %s1455_s19 = sshll.u32 %s242_s18, 6  ;;  %s2585_s25 = scalar_lea.sflag [#allocation3], %s242_s18 }
  0x17   : > { %s1485_s10 = sshll.u32 %s246_s9, 6  ;;  %s2557_s20 = scalar_lea.vmem [#allocation2], %s1455_s19 }
  0x18   : > { %s249_s13 = scalar_lea.vmem %s2625_s0, %s1485_s10  ;;  %s1389_s28 = sshll.u32 %s2557_s20, 4  ;;  %s2578_s28 = int_to_ptr.vmem [resolvable:$true] %s1389_s28 }
  0x19   : > { %v1848_v0 = vld [vmem:[%s249_s13] sm:$0xff]  ;;  %v1850_v1 = vld [vmem:[%s249_s13 + $0x8] sm:$0xff]  ;;  %v1858_v5 = vld [vmem:[%s249_s13 + $0x10] sm:$0xff]  ;;  %s2576_s10 = scalar_lea.hbm %s2631_s6, %s1486_s26  ;;  %s1690_s11 = scalar_lea.vmem %s2578_s28, 1024 }
  0x1a   : > { %v1852_v2 = vld [vmem:[%s249_s13 + $0x20] sm:$0xff]  ;;  %v303_v3 = vadd.f32 %v1850_v1, %v1848_v0  ;;  %v1856_v4 = vld [vmem:[%s249_s13 + $0x28] sm:$0xff]  ;;  %v1860_v6 = vld [vmem:[%s249_s13 + $0x18] sm:$0xff]  ;;  %p1691_p11 = scmp.ne.s32.totalorder %s2578_s28, %s1690_s11  ;;  %s1757_s12 = smov [#allocation2]  }
  0x1b   : > { %v309_v7 = vadd.f32 %v1856_v4, %v1852_v2  ;;  %v1864_v8 = vld [vmem:[%s249_s13 + $0x30] sm:$0xff]  ;;  %v1866_v9 = vld [vmem:[%s249_s13 + $0x38] sm:$0xff]  ;;  %v306_v10 = vadd.f32 %v1860_v6, %v1858_v5  ;;  %s1694_s13 = sshll.u32 %s1757_s12, 4  ;;  %s1695_s13 = int_to_ptr.vmem [resolvable:$false] %s1694_s13 }
  0x1c   : > { %304 = vadd.xlane.f32.xlu0 %v303_v3  ;;  %v312_v11 = vadd.f32 %v1866_v9, %v1864_v8  ;;  %p1692_p12 = pnand %p1691_p11, %p1833_p5  ;;  %s1696_s14 = scalar_lea.vmem %s1695_s13, 2048 }
  0x1d   : > { %310 = vadd.xlane.f32.xlu1 %v309_v7  ;;  %p1697_p0 = scmp.lt.s32.totalorder %s2578_s28, %s1695_s13  ;;  %p1698_p1 = scmp.lt.s32.totalorder %s1696_s14, %s1690_s11 }
  0x1e   : > { %p1693_p13 = pneg %p1692_p12 }
  0x1f   : > { %p1699_p2 = por %p1698_p1, %p1697_p0 }
  0x20   : > { %307 = vadd.xlane.f32.xlu0 %v306_v10 }
  0x21   : > { %313 = vadd.xlane.f32.xlu1 %v312_v11  ;;  %p1700_p3 = pnand %p1699_p2, %p1693_p13 }
  0xa5   : > { %v305_v13 = vpop.xlane.xlu0 %304 }
  0xa6   : > { %v311_v14 = vpop.xlane.xlu1 %310 }
  0xa9   : > { %v308_v15 = vpop.xlane.xlu0 %307 }
  0xaa   : > { %v315_v16 = vadd.f32 %v308_v15, %v305_v13  ;;  %v314_v17 = vpop.xlane.xlu1 %313 }
  0xac   : > { %v316_v18 = vadd.f32 %v315_v16, %v311_v14 }
  0xae   : > { %v317_v19 = vadd.f32 %v316_v18, %v314_v17 }
  0xb0   : > { %v318_v20 = vrot.slane %v317_v19, 4 }
  0xb2   : > { %v319_v21 = vadd.f32 %v318_v20, %v317_v19 }
  0xb4   : > { %v320_v22 = vrot.slane %v319_v21, 2 }
  0xb6   : > { %v321_v23 = vadd.f32 %v320_v22, %v319_v21 }
  0xb8   : > { %v322_v24 = vrot.slane %v321_v23, 1 }
  0xba   : > { %v323_v25 = vadd.f32 %v322_v24, %v321_v23 }
  0xbc   : > { %v324_v26 = vmul.f32 0.00012207031, %v323_v25 }
  0xbe   : > { %v1877_v27 = vsub.f32 %v1858_v5, %v324_v26  ;;  %v1880_v28 = vsub.f32 %v1860_v6, %v324_v26  ;;  %v1883_v29 = vsub.f32 %v1848_v0, %v324_v26  ;;  %v1886_v30 = vsub.f32 %v1850_v1, %v324_v26 }
  0xbf   : > { %v1889_v31 = vsub.f32 %v1852_v2, %v324_v26  ;;  %v1892_v32 = vsub.f32 %v1856_v4, %v324_v26  ;;  %v331_v45 = vsub.f32 %v1864_v8, %v324_v26  ;;  %v332_v46 = vsub.f32 %v1866_v9, %v324_v26 }
  0xc0   : > { %v335_v33 = vmul.f32 %v1877_v27, %v1877_v27  ;;  %v336_v34 = vmul.f32 %v1880_v28, %v1880_v28  ;;  %v333_v35 = vmul.f32 %v1883_v29, %v1883_v29  ;;  %v334_v36 = vmul.f32 %v1886_v30, %v1886_v30 }
  0xc1   : > { %v337_v39 = vmul.f32 %v1889_v31, %v1889_v31  ;;  %v338_v40 = vmul.f32 %v1892_v32, %v1892_v32  ;;  %v339_v47 = vmul.f32 %v331_v45, %v331_v45  ;;  %v340_v48 = vmul.f32 %v332_v46, %v332_v46 }
  0xc2   : > { %v344_v37 = vadd.f32 %v336_v34, %v335_v33  ;;  %v341_v38 = vadd.f32 %v334_v36, %v333_v35 }
  0xc3   : > { %v347_v41 = vadd.f32 %v338_v40, %v337_v39  ;;  %v350_v49 = vadd.f32 %v340_v48, %v339_v47 }
  0xc4   : > { %345 = vadd.xlane.f32.xlu1 %v344_v37  ;;  %342 = vadd.xlane.f32.xlu0 %v341_v38 }
  0xc8   : > { %348 = vadd.xlane.f32.xlu0 %v347_v41 }
  0xd5   : > { %390 = vperm.xlu1 %1534, %v1909_v42  }
  0xd9   : > { %1535 = vset.pattern.permute.xlu1 %v1753_v44 }
  0xda   : > { %410 = vperm.xlu1 %1535, %v1915_v43  }
  0xde   : > { %414 = vperm.xlu1 %1535, %v1909_v42   ;;  %385 = vperm.xlu0 %1533, %v1915_v43  }
  0xe2   : > { %1536 = vset.pattern.permute.xlu1 %v2632_v12  ;;  %1539 = vset.pattern.permute.xlu0 %v1754_v52 }
  0xe3   : > { %482 = vperm.xlu0 %1539, %v1932_v51  }
  0xe7   : > { %1540 = vset.pattern.permute.xlu0 %v1755_v53 }
  0xe8   : > { %612 = vperm.xlu0 %1540, %v1926_v50  }
  0xec   : > { %624 = vperm.xlu0 %1540, %v1909_v42  }
  0xf0   : > { %1542 = vset.pattern.permute.xlu0 %v2632_v12 }
 0x102   : > { %351 = vadd.xlane.f32.xlu1 %v350_v49 }
 0x113   : > { %375 = vperm.xlu1 %1536, %v1926_v50  }
 0x117   : > { %380 = vperm.xlu1 %1536, %v1932_v51  }
 0x11b   : > { %1537 = vset.pattern.permute.xlu1 %v1753_v44 }
 0x11c   : > { %402 = vperm.xlu1 %1537, %v1926_v50  }
 0x120   : > { %406 = vperm.xlu1 %1537, %v1932_v51  }
 0x124   : > { %1538 = vset.pattern.permute.xlu1 %v1754_v52 }
 0x125   : > { %478 = vperm.xlu1 %1538, %v1926_v50  }
 0x129   : > { %486 = vperm.xlu1 %1538, %v1915_v43  }
 0x12d   : > { %490 = vperm.xlu1 %1538, %v1909_v42  }
 0x131   : > { %1541 = vset.pattern.permute.xlu1 %v1755_v53 }
 0x132   : > { %616 = vperm.xlu1 %1541, %v1932_v51  }
 0x136   : > { %620 = vperm.xlu1 %1541, %v1915_v43  }
 0x13a   : > { %1543 = vset.pattern.permute.xlu1 %v2632_v12 }
 0x14d   : > { %v346_v54 = vpop.xlane.xlu1 %345  ;;  %v343_v56 = vpop.xlane.xlu0 %342 }
 0x14e   : > { %v353_v60 = vadd.f32 %v346_v54, %v343_v56 }
 0x151   : > { %v391_v55 = vpop.permute.xlu1 %390  ;;  %v349_v58 = vpop.xlane.xlu0 %348 }
 0x152   : > { %v354_v61 = vadd.f32 %v353_v60, %v349_v58 }
 0x155   : > { %v411_v57 = vpop.permute.xlu1 %410 }
 0x159   : > { %v415_v59 = vpop.permute.xlu1 %414  ;;  %v386_v25 = vpop.permute.xlu0 %385 }
 0x18b   : > { %v352_v62 = vpop.xlane.xlu1 %351 }
 0x18c   : > { %v355_v63 = vadd.f32 %v354_v61, %v352_v62 }
 0x18e   : > { %v356_v3 = vrot.slane %v355_v63, 4 }
 0x18f   : > { %v376_v16 = vpop.permute.xlu1 %375 }
 0x190   : > { %v357_v7 = vadd.f32 %v356_v3, %v355_v63 }
 0x192   : > { %v358_v10 = vrot.slane %v357_v7, 2 }
 0x193   : > { %v381_v18 = vpop.permute.xlu1 %380 }
 0x194   : > { %v359_v11 = vadd.f32 %v358_v10, %v357_v7 }
 0x196   : > { %v360_v13 = vrot.slane %v359_v11, 1 }
 0x197   : > { %v403_v19 = vpop.permute.xlu1 %402 }
 0x198   : > { %v361_v14 = vadd.f32 %v360_v13, %v359_v11 }
 0x19a   : > { %v362_v15 = vmul.f32 0.00012207031, %v361_v14 }
 0x19b   : > { %v407_v34 = vpop.permute.xlu1 %406 }
 0x19c   : > { %v363_v17 = vadd.f32 1e-05, %v362_v15 }
 0x19e   : > { %1558 = vrsqrt.f32 %v363_v17 }
 0x1ab   : > { %v1559_v20 = vpop.eup %1558 }
 0x1ac   : > { %v365_v21 = vmul.f32 %v1559_v20, %v1883_v29  ;;  %v366_v22 = vmul.f32 %v1559_v20, %v1886_v30  ;;  %v367_v23 = vmul.f32 %v1559_v20, %v1877_v27  ;;  %v368_v24 = vmul.f32 %v1559_v20, %v1880_v28 }
 0x1ad   : > { %v369_v26 = vmul.f32 %v1559_v20, %v1889_v31  ;;  %v370_v33 = vmul.f32 %v1559_v20, %v1892_v32  ;;  %v372_v35 = vmul.f32 %v1559_v20, %v332_v46  ;;  %v371_v36 = vmul.f32 %v1559_v20, %v331_v45 }
 0x1ae   : > { %v393_v37 = vmul.f32 %v376_v16, %v365_v21  ;;  %v394_v38 = vmul.f32 %v376_v16, %v366_v22  ;;  %v395_v39 = vmul.f32 %v381_v18, %v367_v23  ;;  %v396_v40 = vmul.f32 %v381_v18, %v368_v24 }
 0x1af   : > { %v397_v41 = vmul.f32 %v386_v25, %v369_v26  ;;  %v398_v29 = vmul.f32 %v386_v25, %v370_v33  ;;  %v400_v44 = vmul.f32 %v391_v55, %v372_v35  ;;  %v399_v30 = vmul.f32 %v391_v55, %v371_v36 }
 0x1b0   : > { %v1953_v47 = vadd.f32 %v403_v19, %v393_v37  ;;  %v1955_v27 = vadd.f32 %v403_v19, %v394_v38  ;;  %v1957_v28 = vadd.f32 %v407_v34, %v395_v39  ;;  %v1959_v31 = vadd.f32 %v407_v34, %v396_v40 }
 0x1b1   : > { %v421_v32 = vadd.f32 %v411_v57, %v397_v41  ;;  %v422_v48 = vadd.f32 %v411_v57, %v398_v29  ;;  %v424_v46 = vadd.f32 %v415_v59, %v400_v44  ;;  %v423_v45 = vadd.f32 %v415_v59, %v399_v30 }
 0x1b2   : > { %v425_v49 = vsub.f32 0.0, %v1953_v47  ;;  %v426_v52 = vsub.f32 0.0, %v1955_v27  ;;  %v427_v53 = vsub.f32 0.0, %v1957_v28  ;;  %v428_v56 = vsub.f32 0.0, %v1959_v31 }
 0x1b3   : > { %v429_v54 = vsub.f32 0.0, %v421_v32  ;;  %v430_v55 = vsub.f32 0.0, %v422_v48  ;;  %v432_v61 = vsub.f32 0.0, %v424_v46  ;;  %v431_v3 = vsub.f32 0.0, %v423_v45 }
 0x1b4   : > { %v433_v58 = vmul.f32 1.442695, %v425_v49  ;;  %v435_v60 = vmul.f32 1.442695, %v426_v52  ;;  %v437_v57 = vmul.f32 1.442695, %v427_v53 }
 0x1b5   : > { %v441_v62 = vmul.f32 1.442695, %v429_v54  ;;  %v443_v63 = vmul.f32 1.442695, %v430_v55  ;;  %v439_v59 = vmul.f32 1.442695, %v428_v56 }
 0x1b6   : > { %1560 = vpow2.f32 %v433_v58  ;;  %v447_v7 = vmul.f32 1.442695, %v432_v61  ;;  %v445_v10 = vmul.f32 1.442695, %v431_v3 }
 0x1b7   : > { %1562 = vpow2.f32 %v435_v60 }
 0x1b8   : > { %1564 = vpow2.f32 %v441_v62 }
 0x1b9   : > { %1566 = vpow2.f32 %v443_v63 }
 0x1ba   : > { %1568 = vpow2.f32 %v437_v57 }
 0x1bb   : > { %1570 = vpow2.f32 %v439_v59 }
 0x1bc   : > { %1572 = vpow2.f32 %v447_v7 }
 0x1bd   : > { %1574 = vpow2.f32 %v445_v10 }
 0x1c3   : > { %v1561_v11 = vpop.eup %1560 }
 0x1c4   : > { %v1563_v13 = vpop.eup %1562  ;;  %v449_v14 = vadd.f32 1.0, %v1561_v11 }
 0x1c5   : > { %v1565_v15 = vpop.eup %1564  ;;  %v450_v16 = vadd.f32 1.0, %v1563_v13 }
 0x1c6   : > { %v1567_v17 = vpop.eup %1566  ;;  %1576 = vrcp.f32 %v449_v14  ;;  %v453_v18 = vadd.f32 1.0, %v1565_v15 }
 0x1c7   : > { %v1569_v19 = vpop.eup %1568  ;;  %1578 = vrcp.f32 %v450_v16  ;;  %v454_v20 = vadd.f32 1.0, %v1567_v17 }
 0x1c8   : > { %v1571_v21 = vpop.eup %1570  ;;  %1580 = vrcp.f32 %v453_v18  ;;  %v451_v22 = vadd.f32 1.0, %v1569_v19 }
 0x1c9   : > { %v1573_v23 = vpop.eup %1572  ;;  %1582 = vrcp.f32 %v454_v20  ;;  %v452_v24 = vadd.f32 1.0, %v1571_v21 }
 0x1ca   : > { %v1575_v25 = vpop.eup %1574  ;;  %1584 = vrcp.f32 %v451_v22  ;;  %v456_v26 = vadd.f32 1.0, %v1573_v23 }
 0x1cb   : > { %1586 = vrcp.f32 %v452_v24  ;;  %v455_v33 = vadd.f32 1.0, %v1575_v25 }
 0x1cc   : > { %1588 = vrcp.f32 %v456_v26 }
 0x1cd   : > { %1590 = vrcp.f32 %v455_v33 }
 0x1d3   : > { %v1577_v34 = vpop.eup %1576 }
 0x1d4   : > { %v1579_v35 = vpop.eup %1578  ;;  %v458_v55 = vmul.f32 %v1577_v34, %v1953_v47  ;;  %v1547_v47 = vld [vmem:[%s2628_s3 + $0x8] sm:$0xff]  }
 0x1d5   : > { %v1581_v36 = vpop.eup %1580  ;;  %v460_v30 = vmul.f32 %v1579_v35, %v1955_v27  ;;  %v479_v27 = vpop.permute.xlu1 %478 }
 0x1d6   : > { %v1583_v37 = vpop.eup %1582  ;;  %v466_v29 = vmul.f32 %v1581_v36, %v421_v32  ;;  %v1546_v32 = vld [vmem:[%s2628_s3] sm:$0xff]  }
 0x1d7   : > { %v1585_v38 = vpop.eup %1584  ;;  %v468_v40 = vmul.f32 %v1583_v37, %v422_v48 }
 0x1d8   : > { %v1587_v39 = vpop.eup %1586  ;;  %v462_v56 = vmul.f32 %v1585_v38, %v1957_v28 }
 0x1d9   : > { %v1589_v41 = vpop.eup %1588  ;;  %v464_v49 = vmul.f32 %v1587_v39, %v1959_v31  ;;  %v487_v7 = vpop.permute.xlu1 %486 }
 0x1da   : > { %v1591_v44 = vpop.eup %1590  ;;  %v472_v52 = vmul.f32 %v1589_v41, %v424_v46  ;;  %v473_v48 = vpack.c.bf16 %v462_v56, %v458_v55 }
 0x1db   : > { %v470_v53 = vmul.f32 %v1591_v44, %v423_v45  ;;  %v474_v60 = vpack.c.bf16 %v464_v49, %v460_v30  ;;  %v483_v45 = vpop.permute.xlu0 %482 }
 0x1dc   : > { %v476_v54 = vpack.c.bf16 %v472_v52, %v468_v40 }
 0x1dd   : > { %v475_v58 = vpack.c.bf16 %v470_v53, %v466_v29  ;;  %v491_v23 = vpop.permute.xlu1 %490 }
 0x1de   : > { %522 = vmatprep.subr.bf16.mxu0 %v476_v54 }
 0x1df   : > { %523 = vmatpush1.bf16.msra.mxu0 %v475_v58 }
 0x1e0   : > { %524 = vmatprep.subr.bf16.mxu0 %v474_v60 }
 0x1e3   : > { %525 = vmatpush1.bf16.msra.mxu0 %v473_v48 }
 0x1e6   : > { %1460 = vmatmul.mubr.msk.bf16.vlgmr.msra.gmra.mxu0 %vm503_vm0, %v1546_v32 }
 0x1e7   : > { %552 = vmatprep.mubr.bf16.mxu0 %v2632_v12 }
 0x1ee   : > { %1461 = vmatmul.mubr.msk.bf16.gmra.mxu0 %vm503_vm0, %v1547_v47 }
 0x1ef   : > { %1338 = vmatprep.mubr.bf16.mxu0 %v2632_v12 }
 0x2a6   : > { %v544_v28 = vpop.f32.mrf.mxu0 }
 0x2a7   : > { %v1979_v31 = vadd.f32 %v544_v28, %v479_v27 }
 0x2a8   : > { %v546_v46 = vpop.f32.mrf.mxu0 }
 0x2a9   : > { %v563_v61 = vsub.f32 0.0, %v1979_v31  ;;  %v1982_v62 = vadd.f32 %v546_v46, %v479_v27  ;;  %v613_v46 = vpop.permute.xlu0 %612 }
 0x2aa   : > { %v548_v63 = vpop.f32.mrf.mxu0 }
 0x2ab   : > { %v571_v3 = vmul.f32 1.442695, %v563_v61  ;;  %v564_v57 = vsub.f32 0.0, %v1982_v62  ;;  %v1985_v59 = vadd.f32 %v548_v63, %v483_v45  ;;  %v617_v63 = vpop.permute.xlu1 %616 }
 0x2ac   : > { %v550_v10 = vpop.f32.mrf.mxu0 }
 0x2ad   : > { %1592 = vpow2.f32 %v571_v3  ;;  %v573_v11 = vmul.f32 1.442695, %v564_v57  ;;  %v565_v13 = vsub.f32 0.0, %v1985_v59  ;;  %v1988_v14 = vadd.f32 %v550_v10, %v483_v45 }
 0x2ae   : > { %v554_v15 = vpop.f32.mrf.mxu0 }
 0x2af   : > { %1594 = vpow2.f32 %v573_v11  ;;  %v575_v16 = vmul.f32 1.442695, %v565_v13  ;;  %v566_v17 = vsub.f32 0.0, %v1988_v14  ;;  %v1991_v18 = vadd.f32 %v554_v15, %v487_v7 }
 0x2b0   : > { %v556_v19 = vpop.f32.mrf.mxu0 }
 0x2b1   : > { %1596 = vpow2.f32 %v575_v16  ;;  %v577_v20 = vmul.f32 1.442695, %v566_v17  ;;  %v567_v21 = vsub.f32 0.0, %v1991_v18  ;;  %v1994_v22 = vadd.f32 %v556_v19, %v487_v7 }
 0x2b2   : > { %v558_v24 = vpop.f32.mrf.mxu0 }
 0x2b3   : > { %1598 = vpow2.f32 %v577_v20  ;;  %v579_v25 = vmul.f32 1.442695, %v567_v21  ;;  %v568_v26 = vsub.f32 0.0, %v1994_v22  ;;  %v1997_v33 = vadd.f32 %v558_v24, %v491_v23  ;;  %v621_v20 = vpop.permute.xlu1 %620 }
 0x2b4   : > { %v560_v34 = vpop.f32.mrf.mxu0 }
 0x2b5   : > { %1600 = vpow2.f32 %v579_v25  ;;  %v581_v35 = vmul.f32 1.442695, %v568_v26  ;;  %v569_v36 = vsub.f32 0.0, %v1997_v33  ;;  %v2000_v37 = vadd.f32 %v560_v34, %v491_v23 }
 0x2b7   : > { %1602 = vpow2.f32 %v581_v35  ;;  %v583_v38 = vmul.f32 1.442695, %v569_v36  ;;  %v570_v39 = vsub.f32 0.0, %v2000_v37  ;;  %v625_v36 = vpop.permute.xlu0 %624 }
 0x2b9   : > { %1604 = vpow2.f32 %v583_v38  ;;  %v585_v40 = vmul.f32 1.442695, %v570_v39 }
 0x2ba   : > { %v1593_v41 = vpop.eup %1592 }
 0x2bb   : > { %v587_v29 = vadd.f32 1.0, %v1593_v41  ;;  %1606 = vpow2.f32 %v585_v40 }
 0x2bc   : > { %v1595_v44 = vpop.eup %1594 }
 0x2bd   : > { %1608 = vrcp.f32 %v587_v29  ;;  %v588_v30 = vadd.f32 1.0, %v1595_v44 }
 0x2be   : > { %v1597_v49 = vpop.eup %1596 }
 0x2bf   : > { %1610 = vrcp.f32 %v588_v30  ;;  %v589_v52 = vadd.f32 1.0, %v1597_v49 }
 0x2c0   : > { %v1599_v53 = vpop.eup %1598 }
 0x2c1   : > { %1612 = vrcp.f32 %v589_v52  ;;  %v590_v54 = vadd.f32 1.0, %v1599_v53 }
 0x2c2   : > { %v1601_v55 = vpop.eup %1600 }
 0x2c3   : > { %1614 = vrcp.f32 %v590_v54  ;;  %v591_v56 = vadd.f32 1.0, %v1601_v55 }
 0x2c4   : > { %v1603_v58 = vpop.eup %1602 }
 0x2c5   : > { %1616 = vrcp.f32 %v591_v56  ;;  %v592_v60 = vadd.f32 1.0, %v1603_v58 }
 0x2c6   : > { %v1605_v48 = vpop.eup %1604 }
 0x2c7   : > { %1618 = vrcp.f32 %v592_v60  ;;  %v593_v32 = vadd.f32 1.0, %v1605_v48 }
 0x2c8   : > { %v1607_v47 = vpop.eup %1606 }
 0x2c9   : > { %1620 = vrcp.f32 %v593_v32  ;;  %v594_v27 = vadd.f32 1.0, %v1607_v47 }
 0x2ca   : > { %v1609_v28 = vpop.eup %1608 }
 0x2cb   : > { %v596_v45 = vmul.f32 %v1609_v28, %v1979_v31  ;;  %1622 = vrcp.f32 %v594_v27 }
 0x2cc   : > { %v1611_v61 = vpop.eup %1610 }
 0x2cd   : > { %v598_v3 = vmul.f32 %v1611_v61, %v1982_v62  ;;  %v627_v57 = vmul.f32 %v613_v46, %v596_v45 }
 0x2ce   : > { %v1613_v7 = vpop.eup %1612 }
 0x2cf   : > { %v628_v10 = vmul.f32 %v613_v46, %v598_v3  ;;  %v600_v11 = vmul.f32 %v1613_v7, %v1985_v59  ;;  %v2008_v16 = vadd.f32 %v627_v57, %v1848_v0 }
 0x2d0   : > { %v1615_v13 = vpop.eup %1614 }
 0x2d1   : > { %v602_v15 = vmul.f32 %v1615_v13, %v1988_v14  ;;  %2648 = vst [vmem:[#allocation5_spill] sm:$0xff] %v2008_v16  ;;  %v2011_v17 = vadd.f32 %v628_v10, %v1850_v1  ;;  %v629_v31 = vmul.f32 %v617_v63, %v600_v11 }
 0x2d2   : > { %v1617_v19 = vpop.eup %1616 }
 0x2d3   : > { %2649 = vst [vmem:[#allocation6_spill] sm:$0xff] %v2011_v17  ;;  %v604_v21 = vmul.f32 %v1617_v19, %v1991_v18  ;;  %v630_v62 = vmul.f32 %v617_v63, %v602_v15  ;;  %v643_v23 = vadd.f32 %v2011_v17, %v2008_v16  ;;  %v2018_v14 = vadd.f32 %v629_v31, %v1858_v5 }
 0x2d4   : > { %v1619_v24 = vpop.eup %1618 }
 0x2d5   : > { %v606_v59 = vmul.f32 %v1619_v24, %v1994_v22  ;;  %2650 = vst [vmem:[#allocation7_spill] sm:$0xff] %v2018_v14  ;;  %v2021_v0 = vadd.f32 %v630_v62, %v1860_v6  ;;  %v631_v1 = vmul.f32 %v621_v20, %v604_v21  ;;  %644 = vadd.xlane.f32.xlu1 %v643_v23  ;;  %v270_v21 = vld [vmem:[%s2627_s2 + $0x78] sm:$0xff]  ;;  %v267_v62 = vld [vmem:[%s2627_s2 + $0x60] sm:$0xff]  ;;  %v268_v23 = vld [vmem:[%s2627_s2 + $0x68] sm:$0xff] }
 0x2d6   : > { %v1621_v25 = vpop.eup %1620  ;;  %v265_v24 = vld [vmem:[%s2627_s2 + $0x50] sm:$0xff] }
 0x2d7   : > { %2651 = vst [vmem:[#allocation8_spill] sm:$0xff] %v2021_v0  ;;  %v608_v26 = vmul.f32 %v1621_v25, %v1997_v33  ;;  %v632_v34 = vmul.f32 %v621_v20, %v606_v59  ;;  %v646_v18 = vadd.f32 %v2021_v0, %v2018_v14  ;;  %v2028_v22 = vadd.f32 %v631_v1, %v1852_v2  ;;  %v266_v59 = vld [vmem:[%s2627_s2 + $0x58] sm:$0xff]  ;;  %v263_v1 = vld [vmem:[%s2627_s2 + $0x40] sm:$0xff]  ;;  %v264_v25 = vld [vmem:[%s2627_s2 + $0x48] sm:$0xff] }
 0x2d8   : > { %v1623_v35 = vpop.eup %1622 }
 0x2d9   : > { %v610_v38 = vmul.f32 %v1623_v35, %v2000_v37  ;;  %2652 = vst [vmem:[#allocation9_spill] sm:$0xff] %v2028_v22  ;;  %v2031_v5 = vadd.f32 %v632_v34, %v1856_v4  ;;  %v633_v6 = vmul.f32 %v625_v36, %v608_v26  ;;  %647 = vadd.xlane.f32.xlu0 %v646_v18  ;;  %v261_v26 = vld [vmem:[%s2627_s2 + $0x30] sm:$0xff]  ;;  %v259_v18 = vld [vmem:[%s2627_s2 + $0x20] sm:$0xff]  ;;  %v262_v35 = vld [vmem:[%s2627_s2 + $0x38] sm:$0xff] }
 0x2da   : > { %v269_v34 = vld [vmem:[%s2627_s2 + $0x70] sm:$0xff] }
 0x2db   : > { %2653 = vst [vmem:[#allocation10_spill] sm:$0xff] %v2031_v5  ;;  %v634_v39 = vmul.f32 %v625_v36, %v610_v38  ;;  %v649_v33 = vadd.f32 %v2031_v5, %v2028_v22  ;;  %v2036_v40 = vadd.f32 %v633_v6, %v1864_v8  ;;  %v257_v36 = vld [vmem:[%s2627_s2 + $0x10] sm:$0xff]  ;;  %v260_v38 = vld [vmem:[%s2627_s2 + $0x28] sm:$0xff]  ;;  %v255_v6 = vld [vmem:[%s2627_s2] sm:$0xff] }
 0x2dd   : > { %2654 = vst [vmem:[#allocation11_spill] sm:$0xff] %v2036_v40  ;;  %v2039_v41 = vadd.f32 %v634_v39, %v1866_v9  ;;  %650 = vadd.xlane.f32.xlu0 %v649_v33  ;;  %v258_v39 = vld [vmem:[%s2627_s2 + $0x18] sm:$0xff]  ;;  %v256_v33 = vld [vmem:[%s2627_s2 + $0x8] sm:$0xff] }
 0x2df   : > { %2655 = vst [vmem:[#allocation12_spill] sm:$0xff] %v2039_v41  ;;  %v652_v2 = vadd.f32 %v2039_v41, %v2036_v40 }
 0x2e1   : > { %653 = vadd.xlane.f32.xlu1 %v652_v2 }
 0x35e   : > { %v645_v4 = vpop.xlane.xlu1 %644 }
 0x362   : > { %v648_v37 = vpop.xlane.xlu0 %647 }
 0x363   : > { %v655_v44 = vadd.f32 %v648_v37, %v645_v4 }
 0x366   : > { %v651_v29 = vpop.xlane.xlu0 %650 }
 0x367   : > { %v656_v30 = vadd.f32 %v655_v44, %v651_v29 }
 0x36a   : > { %v654_v49 = vpop.xlane.xlu1 %653 }
 0x36b   : > { %v657_v52 = vadd.f32 %v656_v30, %v654_v49 }
 0x36d   : > { %v658_v53 = vrot.slane %v657_v52, 4 }
 0x36f   : > { %v659_v54 = vadd.f32 %v658_v53, %v657_v52 }
 0x371   : > { %v660_v55 = vrot.slane %v659_v54, 2 }
 0x373   : > { %v661_v8 = vadd.f32 %v660_v55, %v659_v54 }
 0x375   : > { %v662_v56 = vrot.slane %v661_v8, 1 }
 0x377   : > { %v663_v58 = vadd.f32 %v662_v56, %v661_v8 }
 0x379   : > { %v664_v9 = vmul.f32 0.00012207031, %v663_v58 }
 0x37b   : > { %v2044_v60 = vsub.f32 %v2018_v14, %v664_v9  ;;  %v2047_v48 = vsub.f32 %v2021_v0, %v664_v9  ;;  %v2050_v32 = vsub.f32 %v2008_v16, %v664_v9  ;;  %v2053_v47 = vsub.f32 %v2011_v17, %v664_v9 }
 0x37c   : > { %v2056_v27 = vsub.f32 %v2036_v40, %v664_v9  ;;  %v2059_v28 = vsub.f32 %v2039_v41, %v664_v9  ;;  %v2062_v46 = vsub.f32 %v2028_v22, %v664_v9  ;;  %v2065_v45 = vsub.f32 %v2031_v5, %v664_v9 }
 0x37d   : > { %v675_v61 = vmul.f32 %v2044_v60, %v2044_v60  ;;  %v676_v63 = vmul.f32 %v2047_v48, %v2047_v48  ;;  %v673_v3 = vmul.f32 %v2050_v32, %v2050_v32  ;;  %v674_v57 = vmul.f32 %v2053_v47, %v2053_v47 }
 0x37e   : > { %v679_v7 = vmul.f32 %v2056_v27, %v2056_v27  ;;  %v680_v10 = vmul.f32 %v2059_v28, %v2059_v28  ;;  %v677_v15 = vmul.f32 %v2062_v46, %v2062_v46  ;;  %v678_v31 = vmul.f32 %v2065_v45, %v2065_v45 }
 0x37f   : > { %v684_v11 = vadd.f32 %v676_v63, %v675_v61  ;;  %v681_v13 = vadd.f32 %v674_v57, %v673_v3 }
 0x380   : > { %v690_v19 = vadd.f32 %v680_v10, %v679_v7  ;;  %v687_v20 = vadd.f32 %v678_v31, %v677_v15 }
 0x381   : > { %685 = vadd.xlane.f32.xlu1 %v684_v11  ;;  %682 = vadd.xlane.f32.xlu0 %v681_v13 }
 0x385   : > { %691 = vadd.xlane.f32.xlu1 %v690_v19  ;;  %688 = vadd.xlane.f32.xlu0 %v687_v20 }
 0x396   : > { %794 = vperm.xlu1 %1543, %v270_v21   ;;  %v1555_v21 = vld [vmem:[%s2629_s4 + $0x38] sm:$0xff]  }
 0x39a   : > { %779 = vperm.xlu1 %1543, %v267_v62  }
 0x39b   : > { %789 = vperm.xlu0 %1542, %v269_v34  }
 0x39e   : > { %784 = vperm.xlu1 %1543, %v268_v23  }
 0x39f   : > { %754 = vperm.xlu0 %1542, %v262_v35  }
 0x3a2   : > { %769 = vperm.xlu1 %1543, %v265_v24  }
 0x3a3   : > { %744 = vperm.xlu0 %1542, %v260_v38  }
 0x3a6   : > { %774 = vperm.xlu1 %1543, %v266_v59  }
 0x3a7   : > { %734 = vperm.xlu0 %1542, %v258_v39  }
 0x3aa   : > { %759 = vperm.xlu1 %1543, %v263_v1  }
 0x3ab   : > { %724 = vperm.xlu0 %1542, %v256_v33  }
 0x3ae   : > { %764 = vperm.xlu1 %1543, %v264_v25  }
 0x3b2   : > { %749 = vperm.xlu1 %1543, %v261_v26  }
 0x3b6   : > { %739 = vperm.xlu1 %1543, %v259_v18  }
 0x3ba   : > { %729 = vperm.xlu1 %1543, %v257_v36  }
 0x3be   : > { %719 = vperm.xlu1 %1543, %v255_v6  }
 0x40a   : > { %v686_v2 = vpop.xlane.xlu1 %685  ;;  %v683_v37 = vpop.xlane.xlu0 %682 }
 0x40b   : > { %v693_v4 = vadd.f32 %v686_v2, %v683_v37 }
 0x40e   : > { %v689_v29 = vpop.xlane.xlu0 %688  ;;  %v692_v30 = vpop.xlane.xlu1 %691 }
 0x40f   : > { %v694_v44 = vadd.f32 %v693_v4, %v689_v29 }
 0x411   : > { %v695_v49 = vadd.f32 %v694_v44, %v692_v30  ;;  %v1756_v44 = vmov 4  }
 0x412   : > { %v2178_v62 = vpop.permute.xlu1 %794  ;;  %1544 = vset.pattern.permute.xlu1 %v1756_v44  ;;  %1545 = vset.pattern.permute.xlu0 %v1756_v44 }
 0x413   : > { %v696_v52 = vrot.slane %v695_v49, 4  ;;  %1279 = vperm.xlu1 %1544, %v1926_v50   ;;  %1283 = vperm.xlu0 %1545, %v1932_v51  }
 0x415   : > { %v697_v53 = vadd.f32 %v696_v52, %v695_v49 }
 0x416   : > { %v2180_v23 = vpop.permute.xlu1 %779  ;;  %v2192_v34 = vpop.permute.xlu0 %789 }
 0x417   : > { %v698_v54 = vrot.slane %v697_v53, 2  ;;  %1287 = vperm.xlu1 %1544, %v1915_v43  }
 0x419   : > { %v699_v55 = vadd.f32 %v698_v54, %v697_v53 }
 0x41a   : > { %v2182_v24 = vpop.permute.xlu1 %784  ;;  %v2196_v35 = vpop.permute.xlu0 %754 }
 0x41b   : > { %v700_v8 = vrot.slane %v699_v55, 1  ;;  %1291 = vperm.xlu1 %1544, %v1909_v42  }
 0x41d   : > { %v701_v56 = vadd.f32 %v700_v8, %v699_v55 }
 0x41e   : > { %v2184_v59 = vpop.permute.xlu1 %769  ;;  %v745_v6 = vpop.permute.xlu0 %744 }
 0x41f   : > { %v702_v58 = vmul.f32 0.00012207031, %v701_v56 }
 0x421   : > { %v703_v9 = vadd.f32 1e-05, %v702_v58 }
 0x422   : > { %v2186_v1 = vpop.permute.xlu1 %774  ;;  %v735_v4 = vpop.permute.xlu0 %734 }
 0x423   : > { %1624 = vrsqrt.f32 %v703_v9 }
 0x426   : > { %v2188_v25 = vpop.permute.xlu1 %759  ;;  %v725_v53 = vpop.permute.xlu0 %724 }
 0x42a   : > { %v2190_v26 = vpop.permute.xlu1 %764 }
 0x42e   : > { %v2194_v18 = vpop.permute.xlu1 %749 }
 0x430   : > { %v1625_v61 = vpop.eup %1624 }
 0x431   : > { %v710_v63 = vmul.f32 %v1625_v61, %v2065_v45  ;;  %v712_v3 = vmul.f32 %v1625_v61, %v2059_v28  ;;  %v709_v57 = vmul.f32 %v1625_v61, %v2062_v46  ;;  %v711_v7 = vmul.f32 %v1625_v61, %v2056_v27  ;;  %v1548_v28 = vld [vmem:[%s2629_s4] sm:$0xff]   ;;  %v1553_v27 = vld [vmem:[%s2629_s4 + $0x28] sm:$0xff]   ;;  %v1554_v46 = vld [vmem:[%s2629_s4 + $0x30] sm:$0xff]  }
 0x432   : > { %v706_v10 = vmul.f32 %v1625_v61, %v2053_v47  ;;  %v708_v11 = vmul.f32 %v1625_v61, %v2047_v48  ;;  %v705_v31 = vmul.f32 %v1625_v61, %v2050_v32  ;;  %v707_v19 = vmul.f32 %v1625_v61, %v2044_v60  ;;  %v1549_v48 = vld [vmem:[%s2629_s4 + $0x8] sm:$0xff]   ;;  %v1550_v60 = vld [vmem:[%s2629_s4 + $0x10] sm:$0xff]   ;;  %v1551_v32 = vld [vmem:[%s2629_s4 + $0x18] sm:$0xff]   ;;  %v2198_v36 = vpop.permute.xlu1 %739 }
 0x433   : > { %v716_v13 = vpack.c.bf16 %v712_v3, %v710_v63  ;;  %v715_v15 = vpack.c.bf16 %v711_v7, %v709_v57  ;;  %v1552_v47 = vld [vmem:[%s2629_s4 + $0x20] sm:$0xff]  }
 0x434   : > { %v714_v20 = vpack.c.bf16 %v708_v11, %v706_v10  ;;  %v713_v45 = vpack.c.bf16 %v707_v19, %v705_v31 }
 0x435   : > { %873 = vmatprep.subr.bf16.mxu1 %v716_v13 }
 0x436   : > { %874 = vmatpush1.bf16.msra.mxu1 %v715_v15  ;;  %v730_v2 = vpop.permute.xlu1 %729 }
 0x437   : > { %875 = vmatprep.subr.bf16.mxu1 %v714_v20 }
 0x43a   : > { %876 = vmatpush1.bf16.msra.mxu1 %v713_v45  ;;  %v720_v49 = vpop.permute.xlu1 %719 }
 0x43d   : > { %1470 = vmatmul.mubr.msk.bf16.vlgmr.msra.gmra.mxu1 %vm503_vm0, %v1548_v28 }
 0x43e   : > { %903 = vmatprep.mubr.bf16.mxu1 %v2632_v12 }
 0x445   : > { %1471 = vmatmul.mubr.msk.bf16.gmra.mxu1 %vm503_vm0, %v1549_v48 }
 0x446   : > { %913 = vmatprep.mubr.bf16.mxu1 %v2632_v12 }
 0x44d   : > { %1472 = vmatmul.mubr.msk.bf16.gmra.mxu1 %vm503_vm0, %v1550_v60 }
 0x44e   : > { %923 = vmatprep.mubr.bf16.mxu1 %v2632_v12 }
 0x455   : > { %1473 = vmatmul.mubr.msk.bf16.gmra.mxu1 %vm503_vm0, %v1551_v32 }
 0x456   : > { %933 = vmatprep.mubr.bf16.mxu1 %v2632_v12 }
 0x45d   : > { %1474 = vmatmul.mubr.msk.bf16.gmra.mxu1 %vm503_vm0, %v1552_v47 }
 0x45e   : > { %943 = vmatprep.mubr.bf16.mxu1 %v2632_v12 }
 0x465   : > { %1475 = vmatmul.mubr.msk.bf16.gmra.mxu1 %vm503_vm0, %v1553_v27 }
 0x466   : > { %953 = vmatprep.mubr.bf16.mxu1 %v2632_v12 }
 0x46d   : > { %1476 = vmatmul.mubr.msk.bf16.gmra.mxu1 %vm503_vm0, %v1554_v46 }
 0x46e   : > { %963 = vmatprep.mubr.bf16.mxu1 %v2632_v12 }
 0x475   : > { %1477 = vmatmul.mubr.msk.bf16.gmra.mxu1 %vm503_vm0, %v1555_v21 }
 0x4fd   : > { %v895_v38 = vpop.f32.mrf.mxu1 }
 0x4fe   : > { %v2203_v55 = vadd.f32 %v895_v38, %v720_v49 }
 0x4ff   : > { %v897_v39 = vpop.f32.mrf.mxu1 }
 0x500   : > { %v2205_v8 = vadd.f32 %v897_v39, %v720_v49  ;;  %v1006_v50 = vmul.f32 0.044715, %v2203_v55 }
 0x501   : > { %v899_v33 = vpop.f32.mrf.mxu1 }
 0x502   : > { %v2209_v58 = vadd.f32 %v899_v33, %v725_v53  ;;  %v1007_v61 = vmul.f32 0.044715, %v2205_v8  ;;  %v1038_v11 = vmul.f32 %v1006_v50, %v2203_v55 }
 0x503   : > { %v901_v37 = vpop.f32.mrf.mxu1 }
 0x504   : > { %v2213_v51 = vadd.f32 %v901_v37, %v725_v53  ;;  %v1008_v3 = vmul.f32 0.044715, %v2209_v58  ;;  %v1039_v15 = vmul.f32 %v1007_v61, %v2205_v8  ;;  %v1070_v27 = vmul.f32 %v1038_v11, %v2203_v55 }
 0x505   : > { %v905_v29 = vpop.f32.mrf.mxu1 }
 0x506   : > { %v2216_v63 = vadd.f32 %v905_v29, %v730_v2  ;;  %v1009_v42 = vmul.f32 0.044715, %v2213_v51  ;;  %v1040_v45 = vmul.f32 %v1008_v3, %v2209_v58  ;;  %v1071_v39 = vmul.f32 %v1039_v15, %v2205_v8 }
 0x507   : > { %v907_v30 = vpop.f32.mrf.mxu1  ;;  %v1102_v53 = vadd.f32 %v1070_v27, %v2203_v55 }
 0x508   : > { %v2219_v57 = vadd.f32 %v907_v30, %v730_v2  ;;  %v1010_v31 = vmul.f32 0.044715, %v2216_v63  ;;  %v1041_v46 = vmul.f32 %v1009_v42, %v2213_v51 }
 0x509   : > { %v909_v52 = vpop.f32.mrf.mxu1 }
 0x50a   : > { %v2221_v7 = vadd.f32 %v909_v52, %v735_v4  ;;  %v1011_v28 = vmul.f32 0.044715, %v2219_v57  ;;  %v1042_v33 = vmul.f32 %v1010_v31, %v2216_v63 }
 0x50b   : > { %v911_v54 = vpop.f32.mrf.mxu1 }
 0x50c   : > { %v2225_v13 = vadd.f32 %v911_v54, %v735_v4  ;;  %v1012_v60 = vmul.f32 0.044715, %v2221_v7  ;;  %v1043_v4 = vmul.f32 %v1011_v28, %v2219_v57  ;;  %v1073_v54 = vmul.f32 %v1041_v46, %v2213_v51 }
 0x50d   : > { %v2207_v56 = vpop.f32.mrf.mxu1  ;;  %v1074_v61 = vmul.f32 %v1042_v33, %v2216_v63 }
 0x50e   : > { %v1013_v21 = vmul.f32 0.044715, %v2225_v13  ;;  %v1044_v44 = vmul.f32 %v1012_v60, %v2221_v7 }
 0x50f   : > { %v917_v9 = vpop.f32.mrf.mxu1 }
 0x510   : > { %v2230_v19 = vadd.f32 %v917_v9, %v2198_v36  ;;  %v1045_v9 = vmul.f32 %v1013_v21, %v2225_v13  ;;  %v1076_v31 = vmul.f32 %v1044_v44, %v2221_v7  ;;  %v1105_v21 = vadd.f32 %v1073_v54, %v2213_v51 }
 0x511   : > { %v919_v43 = vpop.f32.mrf.mxu1 }
 0x512   : > { %2656 = vst [vmem:[#allocation13_spill] sm:$0xff] %v2230_v19  ;;  %v2234_v48 = vadd.f32 %v919_v43, %v745_v6  ;;  %v1015_v2 = vmul.f32 0.044715, %v2230_v19  ;;  %v1077_v27 = vmul.f32 %v1045_v9, %v2225_v13  ;;  %v1108_v44 = vadd.f32 %v1076_v31, %v2221_v7 }
 0x513   : > { %v921_v10 = vpop.f32.mrf.mxu1 }
 0x514   : > { %2657 = vst [vmem:[#allocation14_spill] sm:$0xff] %v2234_v48  ;;  %v2237_v32 = vadd.f32 %v921_v10, %v745_v6  ;;  %v1072_v6 = vmul.f32 %v1040_v45, %v2209_v58  ;;  %v1016_v29 = vmul.f32 0.044715, %v2234_v48  ;;  %v1047_v43 = vmul.f32 %v1015_v2, %v2230_v19 }
 0x515   : > { %v925_v20 = vpop.f32.mrf.mxu1  ;;  %v1103_v10 = vadd.f32 %v1071_v39, %v2205_v8  ;;  %v1106_v39 = vadd.f32 %v1074_v61, %v2216_v63  ;;  %v1137_v61 = vmul.f32 0.7978846, %v1105_v21 }
 0x516   : > { %2658 = vst [vmem:[#allocation15_spill] sm:$0xff] %v2237_v32  ;;  %v2243_v38 = vadd.f32 %v925_v20, %v2194_v18  ;;  %v1017_v30 = vmul.f32 0.044715, %v2237_v32  ;;  %v1104_v11 = vadd.f32 %v1072_v6, %v2209_v58  ;;  %v1048_v42 = vmul.f32 %v1016_v29, %v2234_v48 }
 0x517   : > { %v927_v47 = vpop.f32.mrf.mxu1  ;;  %v1079_v33 = vmul.f32 %v1047_v43, %v2230_v19  ;;  %v1138_v43 = vmul.f32 0.7978846, %v1106_v39 }
 0x518   : > { %2659 = vst [vmem:[#allocation16_spill] sm:$0xff] %v2243_v38  ;;  %v2254_v49 = vadd.f32 %v927_v47, %v2194_v18  ;;  %v1018_v50 = vmul.f32 0.044715, %v2243_v38  ;;  %v1075_v18 = vmul.f32 %v1043_v4, %v2219_v57  ;;  %v1049_v20 = vmul.f32 %v1017_v30, %v2237_v32 }
 0x519   : > { %v929_v37 = vpop.f32.mrf.mxu1  ;;  %v1134_v47 = vmul.f32 0.7978846, %v1102_v53  ;;  %v1136_v6 = vmul.f32 0.7978846, %v1104_v11  ;;  %v1080_v4 = vmul.f32 %v1048_v42, %v2234_v48 }
 0x51a   : > { %v2267_v15 = vadd.f32 %v929_v37, %v2196_v35  ;;  %v1019_v45 = vmul.f32 0.044715, %v2254_v49  ;;  %v1050_v46 = vmul.f32 %v1018_v50, %v2243_v38  ;;  %v1135_v37 = vmul.f32 0.7978846, %v1103_v10 }
 0x51b   : > { %v931_v52 = vpop.f32.mrf.mxu1  ;;  %v1107_v29 = vadd.f32 %v1075_v18, %v2219_v57  ;;  %v1081_v30 = vmul.f32 %v1049_v20, %v2237_v32  ;;  %1626 = vtanh.f32 %v1134_v47  ;;  %v1109_v50 = vadd.f32 %v1077_v27, %v2225_v13 }
 0x51c   : > { %2660 = vst [vmem:[#allocation17_spill] sm:$0xff] %v2267_v15  ;;  %v2273_v28 = vadd.f32 %v931_v52, %v2196_v35  ;;  %v1020_v35 = vmul.f32 0.044715, %v2267_v15  ;;  %v1051_v52 = vmul.f32 %v1019_v45, %v2254_v49  ;;  %v1082_v9 = vmul.f32 %v1050_v46, %v2243_v38 }
 0x51d   : > { %v935_v3 = vpop.f32.mrf.mxu1  ;;  %v2291_v10 = vadd.f32 %v2207_v56, %v2198_v36  ;;  %v1111_v18 = vadd.f32 %v1079_v33, %v2230_v19  ;;  %1628 = vtanh.f32 %v1135_v37  ;;  %v1112_v42 = vadd.f32 %v1080_v4, %v2234_v48 }
 0x51e   : > { %v1021_v53 = vmul.f32 0.044715, %v2273_v28  ;;  %v1052_v31 = vmul.f32 %v1020_v35, %v2267_v15  ;;  %v1139_v20 = vmul.f32 0.7978846, %v1107_v29  ;;  %1630 = vtanh.f32 %v1136_v6 }
 0x51f   : > { %v937_v60 = vpop.f32.mrf.mxu1  ;;  %v1140_v45 = vmul.f32 0.7978846, %v1108_v44  ;;  %v1083_v47 = vmul.f32 %v1051_v52, %v2254_v49  ;;  %v1113_v21 = vadd.f32 %v1081_v30, %v2237_v32  ;;  %v1114_v36 = vadd.f32 %v1082_v9, %v2243_v38 }
 0x520   : > { %v1053_v27 = vmul.f32 %v1021_v53, %v2273_v28  ;;  %v2301_v56 = vadd.f32 %v935_v3, %v2188_v25  ;;  %v1141_v39 = vmul.f32 0.7978846, %v1109_v50  ;;  %1632 = vtanh.f32 %v1137_v61 }
 0x521   : > { %v939_v2 = vpop.f32.mrf.mxu1  ;;  %1634 = vtanh.f32 %v1138_v43  ;;  %v2304_v33 = vadd.f32 %v937_v60, %v2188_v25  ;;  %v1143_v6 = vmul.f32 0.7978846, %v1111_v18  ;;  %v1014_v4 = vmul.f32 0.044715, %v2291_v10 }
 0x522   : > { %v1144_v35 = vmul.f32 0.7978846, %v1112_v42  ;;  %v1084_v29 = vmul.f32 %v1052_v31, %v2267_v15  ;;  %1636 = vtanh.f32 %v1139_v20  ;;  %v1085_v44 = vmul.f32 %v1053_v27, %v2273_v28 }
 0x523   : > { %v941_v54 = vpop.f32.mrf.mxu1  ;;  %1638 = vtanh.f32 %v1140_v45  ;;  %v1115_v3 = vadd.f32 %v1083_v47, %v2254_v49  ;;  %v1145_v52 = vmul.f32 0.7978846, %v1113_v21  ;;  %v1146_v53 = vmul.f32 0.7978846, %v1114_v36 }
 0x524   : > { %v1022_v9 = vmul.f32 0.044715, %v2301_v56  ;;  %1640 = vtanh.f32 %v1141_v39  ;;  %v1023_v60 = vmul.f32 0.044715, %v2304_v33  ;;  %v2316_v50 = vadd.f32 %v941_v54, %v2190_v26 }
 0x525   : > { %v945_v11 = vpop.f32.mrf.mxu1  ;;  %1642 = vtanh.f32 %v1143_v6  ;;  %v1116_v43 = vadd.f32 %v1084_v29, %v2267_v15  ;;  %v2320_v18 = vadd.f32 %v939_v2, %v2190_v26  ;;  %v2324_v31 = vmul.f32 %v1014_v4, %v2291_v10 }
 0x526   : > { %1644 = vtanh.f32 %v1144_v35  ;;  %v1117_v45 = vadd.f32 %v1085_v44, %v2273_v28  ;;  %v1147_v47 = vmul.f32 0.7978846, %v1115_v3  ;;  %v2328_v54 = vmul.f32 %v1022_v9, %v2301_v56 }
 0x527   : > { %v947_v46 = vpop.f32.mrf.mxu1  ;;  %1646 = vtanh.f32 %v1145_v52  ;;  %v1055_v21 = vmul.f32 %v1023_v60, %v2304_v33  ;;  %v1025_v36 = vmul.f32 0.044715, %v2316_v50  ;;  %v1148_v29 = vmul.f32 0.7978846, %v1116_v43 }
 0x528   : > { %1648 = vtanh.f32 %v1146_v53  ;;  %v2331_v27 = vadd.f32 %v947_v46, %v2184_v59  ;;  %v2336_v2 = vpop.eup %1626  ;;  %v1024_v46 = vmul.f32 0.044715, %v2320_v18  ;;  %v2354_v52 = vadd.f32 %v945_v11, %v2184_v59 }
 0x529   : > { %v949_v37 = vpop.f32.mrf.mxu1  ;;  %v1149_v9 = vmul.f32 0.7978846, %v1117_v45  ;;  %1650 = vtanh.f32 %v1147_v47  ;;  %v2368_v59 = vmul.f32 %v1055_v21, %v2304_v33 }
 0x52a   : > { %v2344_v35 = vpop.eup %1628  ;;  %v2357_v53 = vadd.f32 %v949_v37, %v2186_v1  ;;  %v1027_v60 = vmul.f32 0.044715, %v2331_v27  ;;  %1652 = vtanh.f32 %v1148_v29 }
 0x52b   : > { %v951_v30 = vpop.f32.mrf.mxu1  ;;  %v2351_v3 = vpop.eup %1630  ;;  %1654 = vtanh.f32 %v1149_v9 }
 0x52c   : > { %v2312_v25 = vadd.f32 %v951_v30, %v2186_v1  ;;  %v1057_v1 = vmul.f32 %v1025_v36, %v2316_v50  ;;  %v1026_v36 = vmul.f32 0.044715, %v2354_v52 }
 0x52d   : > { %v955_v61 = vpop.f32.mrf.mxu1 }
 0x52e   : > { %v1029_v42 = vmul.f32 0.044715, %v2312_v25  ;;  %v2342_v6 = vadd.f32 %v955_v61, %v2180_v23  ;;  %v1089_v29 = vmul.f32 %v1057_v1, %v2316_v50  ;;  %v1058_v1 = vmul.f32 %v1026_v36, %v2354_v52 }
 0x52f   : > { %v957_v20 = vpop.f32.mrf.mxu1 }
 0x530   : > { %v2334_v26 = vadd.f32 %v957_v20, %v2180_v23  ;;  %v1061_v39 = vmul.f32 %v1029_v42, %v2312_v25  ;;  %v2365_v20 = vpop.eup %1632  ;;  %v1030_v37 = vmul.f32 0.044715, %v2342_v6 }
 0x531   : > { %v959_v4 = vpop.f32.mrf.mxu1  ;;  %v2373_v47 = vpop.eup %1634 }
 0x532   : > { %v1031_v44 = vmul.f32 0.044715, %v2334_v26  ;;  %v2349_v30 = vadd.f32 %v959_v4, %v2182_v24  ;;  %v1093_v11 = vmul.f32 %v1061_v39, %v2312_v25  ;;  %v2376_v4 = vmul.f32 %v1024_v46, %v2320_v18  ;;  %v2381_v21 = vpop.eup %1636 }
 0x533   : > { %v961_v23 = vpop.f32.mrf.mxu1  ;;  %v1028_v39 = vmul.f32 0.044715, %v2357_v53  ;;  %v2388_v40 = vpop.eup %1638  ;;  %v1059_v46 = vmul.f32 %v1027_v60, %v2331_v27  ;;  %v1062_v22 = vmul.f32 %v1030_v37, %v2342_v6 }
 0x534   : > { %v1063_v61 = vmul.f32 %v1031_v44, %v2334_v26  ;;  %v1032_v43 = vmul.f32 0.044715, %v2349_v30  ;;  %v2363_v42 = vadd.f32 %v961_v23, %v2182_v24  ;;  %v2395_v5 = vpop.eup %1640  ;;  %v1125_v14 = vadd.f32 %v1093_v11, %v2312_v25 }
 0x535   : > { %v965_v45 = vpop.f32.mrf.mxu1  ;;  %v2401_v17 = vpop.eup %1642  ;;  %v1060_v37 = vmul.f32 %v1028_v39, %v2357_v53  ;;  %v1094_v39 = vmul.f32 %v1062_v22, %v2342_v6 }
 0x536   : > { %v1095_v24 = vmul.f32 %v1063_v61, %v2334_v26  ;;  %v1064_v44 = vmul.f32 %v1032_v43, %v2349_v30  ;;  %v1033_v23 = vmul.f32 0.044715, %v2363_v42  ;;  %v2386_v12 = vadd.f32 %v965_v45, %v2192_v34  ;;  %2661 = vst [vmem:[#allocation18_spill] sm:$0xff] %v2401_v17  ;;  %v2407_v9 = vpop.eup %1644 }
 0x537   : > { %v967_v41 = vpop.f32.mrf.mxu1  ;;  %2662 = vst [vmem:[#allocation19_spill] sm:$0xff] %v2407_v9  ;;  %v2415_v19 = vpop.eup %1646  ;;  %v1157_v38 = vmul.f32 0.7978846, %v1125_v14  ;;  %v1126_v15 = vadd.f32 %v1094_v39, %v2342_v6  ;;  %v1086_v39 = vmul.f32 %v2328_v54, %v2301_v56  ;;  %v1078_v54 = vmul.f32 %v2324_v31, %v2291_v10 }
 0x538   : > { %v1065_v61 = vmul.f32 %v1033_v23, %v2363_v42  ;;  %v2393_v43 = vadd.f32 %v967_v41, %v2192_v34  ;;  %v1034_v45 = vmul.f32 0.044715, %v2386_v12  ;;  %v1096_v60 = vmul.f32 %v1064_v44, %v2349_v30  ;;  %v2423_v36 = vpop.eup %1648 }
 0x539   : > { %v969_v0 = vpop.f32.mrf.mxu1  ;;  %v1127_v34 = vadd.f32 %v1095_v24, %v2334_v26  ;;  %v1091_v44 = vmul.f32 %v1059_v46, %v2331_v27  ;;  %2663 = vst [vmem:[#allocation20_spill] sm:$0xff] %v2423_v36  ;;  %v2434_v22 = vpop.eup %1650  ;;  %1656 = vtanh.f32 %v1157_v38  ;;  %v975_v31 = vmul.f32 0.5, %v2205_v8 }
 0x53a   : > { %v1097_v23 = vmul.f32 %v1065_v61, %v2363_v42  ;;  %v1035_v41 = vmul.f32 0.044715, %v2393_v43  ;;  %v1066_v16 = vmul.f32 %v1034_v45, %v2386_v12  ;;  %v2413_v11 = vadd.f32 %v969_v0, %v2178_v62 }
 0x53b   : > { %v971_v48 = vpop.f32.mrf.mxu1  ;;  %v1128_v17 = vadd.f32 %v1096_v60, %v2349_v30  ;;  %v1159_v32 = vmul.f32 0.7978846, %v1127_v34 }
 0x53c   : > { %v1067_v61 = vmul.f32 %v1035_v41, %v2393_v43  ;;  %v2420_v24 = vadd.f32 %v971_v48, %v2178_v62  ;;  %v1129_v9 = vadd.f32 %v1097_v23, %v2363_v42  ;;  %v1098_v45 = vmul.f32 %v1066_v16, %v2386_v12 }
 0x53d   : > { %v1036_v0 = vmul.f32 0.044715, %v2413_v11  ;;  %v1092_v62 = vmul.f32 %v1060_v37, %v2357_v53  ;;  %v1090_v16 = vmul.f32 %v1058_v1, %v2354_v52  ;;  %1658 = vtanh.f32 %v1159_v32 }
 0x53e   : > { %v1099_v46 = vmul.f32 %v1067_v61, %v2393_v43  ;;  %v1037_v41 = vmul.f32 0.044715, %v2420_v24  ;;  %v1130_v48 = vadd.f32 %v1098_v45, %v2386_v12  ;;  %v1161_v36 = vmul.f32 0.7978846, %v1129_v9 }
 0x53f   : > { %v1068_v23 = vmul.f32 %v1036_v0, %v2413_v11  ;;  %v1123_v61 = vadd.f32 %v1091_v44, %v2331_v27  ;;  %v1160_v45 = vmul.f32 0.7978846, %v1128_v17  ;;  %v1088_v1 = vmul.f32 %v2376_v4, %v2320_v18  ;;  %v2447_v44 = vpop.eup %1652 }
 0x540   : > { %v1069_v14 = vmul.f32 %v1037_v41, %v2420_v24  ;;  %v1131_v60 = vadd.f32 %v1099_v46, %v2393_v43  ;;  %v1162_v34 = vmul.f32 0.7978846, %v1130_v48  ;;  %v1124_v41 = vadd.f32 %v1092_v62, %v2357_v53  ;;  %v2453_v48 = vpop.eup %1654 }
 0x541   : > { %v1100_v37 = vmul.f32 %v1068_v23, %v2413_v11  ;;  %1660 = vtanh.f32 %v1161_v36  ;;  %v1121_v17 = vadd.f32 %v1089_v29, %v2316_v50  ;;  %v1122_v32 = vadd.f32 %v1090_v16, %v2354_v52 }
 0x542   : > { %v1101_v0 = vmul.f32 %v1069_v14, %v2420_v24  ;;  %v1163_v9 = vmul.f32 0.7978846, %v1131_v60  ;;  %v1158_v4 = vmul.f32 0.7978846, %v1126_v15  ;;  %v1155_v36 = vmul.f32 0.7978846, %v1123_v61 }
 0x543   : > { %v1132_v46 = vadd.f32 %v1100_v37, %v2413_v11  ;;  %v1119_v14 = vadd.f32 %v2368_v59, %v2304_v33  ;;  %v1120_v60 = vadd.f32 %v1088_v1, %v2320_v18  ;;  %v1156_v37 = vmul.f32 0.7978846, %v1124_v41 }
 0x544   : > { %v1133_v38 = vadd.f32 %v1101_v0, %v2420_v24  ;;  %1662 = vtanh.f32 %v1163_v9  ;;  %v1153_v29 = vmul.f32 0.7978846, %v1121_v17  ;;  %v1118_v16 = vadd.f32 %v1086_v39, %v2301_v56 }
 0x545   : > { %1664 = vtanh.f32 %v1162_v34  ;;  %v1164_v62 = vmul.f32 0.7978846, %v1132_v46  ;;  %v1154_v15 = vmul.f32 0.7978846, %v1122_v32  ;;  %v1151_v34 = vmul.f32 0.7978846, %v1119_v14 }
 0x546   : > { %1666 = vtanh.f32 %v1160_v45  ;;  %v1165_v23 = vmul.f32 0.7978846, %v1133_v38  ;;  %v1110_v61 = vadd.f32 %v1078_v54, %v2291_v10  ;;  %v1152_v45 = vmul.f32 0.7978846, %v1120_v60  ;;  %v1657_v39 = vpop.eup %1656 }
 0x547   : > { %1668 = vtanh.f32 %v1164_v62  ;;  %v974_v59 = vmul.f32 0.5, %v2203_v55  ;;  %v977_v0 = vmul.f32 0.5, %v2213_v51  ;;  %v976_v9 = vmul.f32 0.5, %v2209_v58 }
 0x548   : > { %1670 = vtanh.f32 %v1165_v23  ;;  %v1150_v1 = vmul.f32 0.7978846, %v1118_v16  ;;  %v1203_v41 = vadd.f32 1.0, %v2381_v21  ;;  %v978_v46 = vmul.f32 0.5, %v2216_v63 }
 0x549   : > { %1672 = vtanh.f32 %v1158_v4  ;;  %v979_v38 = vmul.f32 0.5, %v2219_v57  ;;  %v981_v17 = vmul.f32 0.5, %v2225_v13  ;;  %v1205_v55 = vadd.f32 1.0, %v2395_v5 }
 0x54a   : > { %1674 = vtanh.f32 %v1155_v36  ;;  %v1659_v32 = vpop.eup %1658  ;;  %v1142_v8 = vmul.f32 0.7978846, %v1110_v61  ;;  %v980_v51 = vmul.f32 0.5, %v2221_v7  ;;  %v1202_v58 = vadd.f32 1.0, %v2373_v47 }
 0x54b   : > { %1676 = vtanh.f32 %v1156_v37  ;;  %v2474_v62 = vmul.f32 %v1203_v41, %v979_v38  ;;  %v2476_v21 = vmul.f32 %v1205_v55, %v981_v17  ;;  %v1204_v63 = vadd.f32 1.0, %v2388_v40 }
 0x54c   : > { %1678 = vtanh.f32 %v1153_v29  ;;  %v1199_v57 = vadd.f32 1.0, %v2344_v35  ;;  %v1003_v5 = vmul.f32 0.5, %v2393_v43  ;;  %v999_v13 = vmul.f32 0.5, %v2334_v26 }
 0x54d   : > { %1680 = vtanh.f32 %v1154_v15  ;;  %v1001_v36 = vmul.f32 0.5, %v2363_v42  ;;  %v1265_v47 = vpack.c.bf16 %v2476_v21, %v2474_v62  ;;  %v2485_v14 = vmul.f32 %v1202_v58, %v978_v46  ;;  %v1557_v62 = vld [vmem:[%s2630_s5 + $0x8] sm:$0xff]   ;;  %v1280_v21 = vpop.permute.xlu1 %1279 }
 0x54e   : > { %1682 = vtanh.f32 %v1151_v34  ;;  %v1661_v4 = vpop.eup %1660  ;;  %v2487_v54 = vmul.f32 %v1204_v63, %v980_v51  ;;  %v1201_v40 = vadd.f32 1.0, %v2365_v20  ;;  %v1004_v37 = vmul.f32 0.5, %v2413_v11 }
 0x54f   : > { %1684 = vtanh.f32 %v1152_v45  ;;  %v1225_v29 = vadd.f32 1.0, %v1661_v4  ;;  %v1198_v43 = vadd.f32 1.0, %v2336_v2  ;;  %v2494_v16 = vmul.f32 %v1199_v57, %v975_v31 }
 0x550   : > { %1686 = vtanh.f32 %v1150_v1  ;;  %v1264_v42 = vpack.c.bf16 %v2487_v54, %v2485_v14  ;;  %v2496_v15 = vmul.f32 %v1201_v40, %v977_v0  ;;  %v1200_v34 = vadd.f32 1.0, %v2351_v3 }
 0x551   : > { %v1663_v23 = vpop.eup %1662  ;;  %v1005_v20 = vmul.f32 0.5, %v2420_v24  ;;  %v1223_v41 = vadd.f32 1.0, %v1659_v32  ;;  %v2502_v38 = vmul.f32 %v1198_v43, %v974_v59  ;;  %v1002_v0 = vmul.f32 0.5, %v2386_v12 }
 0x552   : > { %v1665_v7 = vpop.eup %1664  ;;  %v1227_v35 = vadd.f32 1.0, %v1663_v23  ;;  %v1263_v2 = vpack.c.bf16 %v2496_v15, %v2494_v16  ;;  %v2504_v17 = vmul.f32 %v1200_v34, %v976_v9  ;;  %v1221_v51 = vadd.f32 1.0, %v1657_v39  ;;  %v2673_v16 = vld [vmem:[#allocation5_spill] sm:$0xff] }
 0x553   : > { %v1667_v60 = vpop.eup %1666  ;;  %v1226_v45 = vadd.f32 1.0, %v1665_v7  ;;  %v1257_v63 = vmul.f32 %v1225_v29, %v1001_v36  ;;  %1688 = vtanh.f32 %v1142_v8  ;;  %v1000_v59 = vmul.f32 0.5, %v2349_v30 }
 0x554   : > { %v1669_v26 = vpop.eup %1668  ;;  %v1224_v3 = vadd.f32 1.0, %v1667_v60  ;;  %v1259_v24 = vmul.f32 %v1227_v35, %v1003_v5  ;;  %v1262_v32 = vpack.c.bf16 %v2504_v17, %v2502_v38  ;;  %v1255_v43 = vmul.f32 %v1223_v41, %v999_v13  ;;  %v2674_v17 = vld [vmem:[#allocation6_spill] sm:$0xff] }
 0x555   : > { %v1671_v61 = vpop.eup %1670  ;;  %v1228_v1 = vadd.f32 1.0, %v1669_v26  ;;  %v1258_v23 = vmul.f32 %v1226_v45, %v1002_v0  ;;  %v997_v12 = vmul.f32 0.5, %v2312_v25  ;;  %v998_v5 = vmul.f32 0.5, %v2342_v6 }
 0x556   : > { %v1673_v11 = vpop.eup %1672  ;;  %v1229_v46 = vadd.f32 1.0, %v1671_v61  ;;  %v1256_v36 = vmul.f32 %v1224_v3, %v1000_v59  ;;  %v1275_v26 = vpack.c.bf16 %v1257_v63, %v1255_v43  ;;  %v995_v8 = vmul.f32 0.5, %v2331_v27  ;;  %v2665_v43 = vld [vmem:[#allocation20_spill] sm:$0xff] }
 0x557   : > { %v1675_v31 = vpop.eup %1674  ;;  %v1260_v55 = vmul.f32 %v1228_v1, %v1004_v37  ;;  %v1222_v9 = vadd.f32 1.0, %v1673_v11  ;;  %v1253_v34 = vmul.f32 %v1221_v51, %v997_v12  ;;  %v996_v13 = vmul.f32 0.5, %v2357_v53 }
 0x558   : > { %v1677_v58 = vpop.eup %1676  ;;  %v1261_v4 = vmul.f32 %v1229_v46, %v1005_v20  ;;  %v1219_v60 = vadd.f32 1.0, %v1675_v31  ;;  %v993_v1 = vmul.f32 0.5, %v2316_v50  ;;  %v994_v11 = vmul.f32 0.5, %v2354_v52 }
 0x559   : > { %v1679_v57 = vpop.eup %1678  ;;  %v1276_v37 = vpack.c.bf16 %v1260_v55, %v1258_v23  ;;  %v1220_v35 = vadd.f32 1.0, %v1677_v58  ;;  %v1254_v61 = vmul.f32 %v1222_v9, %v998_v5  ;;  %v991_v27 = vmul.f32 0.5, %v2304_v33  ;;  %v2668_v5 = vld [vmem:[#allocation16_spill] sm:$0xff] }
 0x55a   : > { %v1681_v7 = vpop.eup %1680  ;;  %v1277_v40 = vpack.c.bf16 %v1261_v4, %v1259_v24  ;;  %v1217_v30 = vadd.f32 1.0, %v1679_v57  ;;  %v1251_v45 = vmul.f32 %v1219_v60, %v995_v8  ;;  %v1213_v3 = vadd.f32 1.0, %v2453_v48  ;;  %v2666_v60 = vld [vmem:[#allocation15_spill] sm:$0xff] }
 0x55b   : > { %v1683_v39 = vpop.eup %1682  ;;  %v1218_v20 = vadd.f32 1.0, %v1681_v7  ;;  %v1274_v41 = vpack.c.bf16 %v1256_v36, %v1254_v61  ;;  %v1252_v46 = vmul.f32 %v1220_v35, %v996_v13  ;;  %v992_v51 = vmul.f32 0.5, %v2320_v18  ;;  %v2664_v7 = vld [vmem:[#allocation17_spill] sm:$0xff]  ;;  %v2669_v35 = vld [vmem:[#allocation19_spill] sm:$0xff]  ;;  %v2671_v61 = vld [vmem:[#allocation14_spill] sm:$0xff] }
 0x55c   : > { %v1685_v29 = vpop.eup %1684  ;;  %1306 = vmatprep.subr.bf16.mxu0 %v1277_v40  ;;  %v1215_v6 = vadd.f32 1.0, %v1683_v39  ;;  %v1273_v0 = vpack.c.bf16 %v1253_v34, %v1251_v45  ;;  %v1249_v55 = vmul.f32 %v1217_v30, %v993_v1  ;;  %v989_v50 = vmul.f32 0.5, %v2273_v28  ;;  %v2667_v39 = vld [vmem:[#allocation18_spill] sm:$0xff] }
 0x55d   : > { %1307 = vmatpush1.bf16.msra.mxu0 %v1276_v37  ;;  %v1687_v25 = vpop.eup %1686  ;;  %v1216_v31 = vadd.f32 1.0, %v1685_v29  ;;  %v1250_v53 = vmul.f32 %v1218_v20, %v994_v11  ;;  %v1211_v4 = vadd.f32 1.0, %v2434_v22  ;;  %v990_v63 = vmul.f32 0.5, %v2301_v56 }
 0x55e   : > { %1308 = vmatprep.subr.bf16.mxu0 %v1275_v26  ;;  %v1214_v58 = vadd.f32 1.0, %v1687_v25  ;;  %v1247_v24 = vmul.f32 %v1215_v6, %v991_v27  ;;  %v1212_v33 = vadd.f32 1.0, %v2447_v44  ;;  %v987_v48 = vmul.f32 0.5, %v2254_v49  ;;  %v2670_v26 = vld [vmem:[#allocation13_spill] sm:$0xff]  ;;  %v1288_v27 = vpop.permute.xlu1 %1287 }
 0x55f   : > { %v1272_v52 = vpack.c.bf16 %v1252_v46, %v1250_v53  ;;  %v1248_v57 = vmul.f32 %v1216_v31, %v992_v51  ;;  %v1245_v59 = vmul.f32 %v1213_v3, %v989_v50  ;;  %v1209_v9 = vadd.f32 1.0, %v2415_v19  ;;  %v2675_v3 = vld [vmem:[#allocation7_spill] sm:$0xff] }
 0x560   : > { %v1271_v23 = vpack.c.bf16 %v1249_v55, %v1247_v24  ;;  %v1246_v18 = vmul.f32 %v1214_v58, %v990_v63  ;;  %v988_v40 = vmul.f32 0.5, %v2664_v7  ;;  %v1210_v28 = vadd.f32 1.0, %v2665_v43  ;;  %v1689_v12 = vpop.eup %1688  ;;  %v2676_v24 = vld [vmem:[#allocation8_spill] sm:$0xff]  ;;  %v2677_v63 = vld [vmem:[#allocation9_spill] sm:$0xff] }
 0x561   : > { %1309 = vmatpush1.bf16.msra.mxu0 %v1274_v41  ;;  %v1243_v22 = vmul.f32 %v1211_v4, %v987_v48  ;;  %v985_v56 = vmul.f32 0.5, %v2666_v60  ;;  %v1207_v37 = vadd.f32 1.0, %v2667_v39  ;;  %v986_v36 = vmul.f32 0.5, %v2668_v5 }
 0x562   : > { %1310 = vmatprep.subr.bf16.mxu0 %v1273_v0  ;;  %v1270_v44 = vpack.c.bf16 %v1248_v57, %v1246_v18  ;;  %v1244_v49 = vmul.f32 %v1212_v33, %v988_v40  ;;  %v1208_v29 = vadd.f32 1.0, %v2669_v35  ;;  %v983_v8 = vmul.f32 0.5, %v2670_v26  ;;  %v2679_v40 = vld [vmem:[#allocation11_spill] sm:$0xff] }
 0x563   : > { %v1269_v19 = vpack.c.bf16 %v1245_v59, %v1243_v22  ;;  %v1241_v34 = vmul.f32 %v1209_v9, %v985_v56  ;;  %v1242_v30 = vmul.f32 %v1210_v28, %v986_v36  ;;  %v984_v13 = vmul.f32 0.5, %v2671_v61  ;;  %v2678_v59 = vld [vmem:[#allocation10_spill] sm:$0xff] }
 0x564   : > { %v1206_v20 = vadd.f32 1.0, %v1689_v12  ;;  %v1239_v25 = vmul.f32 %v1207_v37, %v983_v8  ;;  %v982_v1 = vmul.f32 0.5, %v2291_v10  ;;  %v1556_v10 = vld [vmem:[%s2630_s5] sm:$0xff]   ;;  %v2672_v31 = vmov 0   ;;  %v2680_v12 = vld [vmem:[#allocation12_spill] sm:$0xff] }
 0x565   : > { %1311 = vmatpush1.bf16.msra.mxu0 %v1272_v52  ;;  %v1268_v45 = vpack.c.bf16 %v1244_v49, %v1242_v30  ;;  %v1240_v6 = vmul.f32 %v1208_v29, %v984_v13 }
 0x566   : > { %1312 = vmatprep.subr.bf16.mxu0 %v1271_v23  ;;  %v1267_v41 = vpack.c.bf16 %v1241_v34, %v1239_v25  ;;  %v1238_v11 = vmul.f32 %v1206_v20, %v982_v1  ;;  %v1292_v23 = vpop.permute.xlu1 %1291 }
 0x568   : > { %v1266_v46 = vpack.c.bf16 %v1240_v6, %v1238_v11 }
 0x569   : > { %1313 = vmatpush1.bf16.msra.mxu0 %v1270_v44 }
 0x56a   : > { %1314 = vmatprep.subr.bf16.mxu0 %v1269_v19 }
 0x56d   : > { %1315 = vmatpush1.bf16.msra.mxu0 %v1268_v45 }
 0x56e   : > { %1316 = vmatprep.subr.bf16.mxu0 %v1267_v41 }
 0x571   : > { %1317 = vmatpush1.bf16.msra.mxu0 %v1266_v46 }
 0x572   : > { %1318 = vmatprep.subr.bf16.mxu0 %v1265_v47 }
 0x575   : > { %1319 = vmatpush1.bf16.msra.mxu0 %v1264_v42  ;;  %v1284_v42 = vpop.permute.xlu0 %1283 }
 0x576   : > { %1320 = vmatprep.subr.bf16.mxu0 %v1263_v2 }
 0x579   : > { %1321 = vmatpush1.bf16.msra.mxu0 %v1262_v32 }
 0x57c   : > { %1339 = vmatmul.mubr.bf16.vlgmr.msra.gmra.mxu0 %v1556_v10 }
 0x57d   : > { %1348 = vmatprep.mubr.bf16.mxu0 %v2672_v31 }
 0x584   : > { %1349 = vmatmul.mubr.bf16.gmra.mxu0 %v1557_v62 }
 0x63c   : > { %v1340_v47 = vpop.f32.mrf.mxu0 }
 0x63d   : > { %v1341_v14 = vadd.f32 %v1340_v47, %v1280_v21 }
 0x63e   : > { %v1342_v54 = vpop.f32.mrf.mxu0 }
 0x63f   : > { %v1359_v15 = vadd.f32 %v1341_v14, %v2673_v16  ;;  %v1343_v2 = vadd.f32 %v1342_v54, %v1280_v21 }
 0x640   : > { %v1344_v38 = vpop.f32.mrf.mxu0 }
 0x641   : > { %1367 = vst [vmem:[%s2557_s20] sm:$0xff] %v1359_v15  ;;  %v1360_v32 = vadd.f32 %v1343_v2, %v2674_v17  ;;  %v1345_v0 = vadd.f32 %v1344_v38, %v1284_v42 }
 0x642   : > { %v1346_v55 = vpop.f32.mrf.mxu0 }
 0x643   : > { %1368 = vst [vmem:[%s2557_s20 + $0x8] sm:$0xff] %v1360_v32  ;;  %v1361_v53 = vadd.f32 %v1345_v0, %v2675_v3  ;;  %v1347_v51 = vadd.f32 %v1346_v55, %v1284_v42 }
 0x644   : > { %v1350_v58 = vpop.f32.mrf.mxu0 }
 0x645   : > { %1369 = vst [vmem:[%s2557_s20 + $0x10] sm:$0xff] %v1361_v53  ;;  %v1362_v50 = vadd.f32 %v1347_v51, %v2676_v24  ;;  %v1351_v4 = vadd.f32 %v1350_v58, %v1288_v27 }
 0x646   : > { %v1352_v52 = vpop.f32.mrf.mxu0 }
 0x647   : > { %1370 = vst [vmem:[%s2557_s20 + $0x18] sm:$0xff] %v1362_v50  ;;  %v1363_v57 = vadd.f32 %v1351_v4, %v2677_v63  ;;  %v1353_v33 = vadd.f32 %v1352_v52, %v1288_v27 }
 0x648   : > { %v1354_v48 = vpop.f32.mrf.mxu0 }
 0x649   : > { %1371 = vst [vmem:[%s2557_s20 + $0x20] sm:$0xff] %v1363_v57  ;;  %v1364_v9 = vadd.f32 %v1353_v33, %v2678_v59  ;;  %v1355_v18 = vadd.f32 %v1354_v48, %v1292_v23 }
 0x64a   : > { %v1356_v7 = vpop.f32.mrf.mxu0 }
 0x64b   : > { %1372 = vst [vmem:[%s2557_s20 + $0x28] sm:$0xff] %v1364_v9  ;;  %v1365_v43 = vadd.f32 %v1355_v18, %v2679_v40  ;;  %v1357_v28 = vadd.f32 %v1356_v7, %v1292_v23 }
 0x64d   : > { %1373 = vst [vmem:[%s2557_s20 + $0x30] sm:$0xff] %v1365_v43  ;;  %v1366_v22 = vadd.f32 %v1357_v28, %v2680_v12 }
 0x64f   : > { %1374 = vst [vmem:[%s2557_s20 + $0x38] sm:$0xff] %v1366_v22 }
 0x650   : > { %1703 = shalt.err (!%p1700_p3)
}
 0x651   : > { %s1704_s15 = scalar_lea.hbm %s2576_s10, 1024  ;;  %s1708_s18 = scalar_lea.hbm %s2631_s6, 2048 }
 0x652   : > { %p1705_p4 = scmp.ne.s32.totalorder %s2576_s10, %s1704_s15  ;;  %p1709_p9 = scmp.lt.s32.totalorder %s2576_s10, %s2631_s6 }
 0x653   : > { %p1710_p10 = scmp.lt.s32.totalorder %s1708_s18, %s1704_s15 }
 0x654   : > { %p1706_p7 = pnand %p1705_p4, %p1833_p5 }
 0x655   : > { %p1711_p11 = por %p1710_p10, %p1709_p9 }
 0x656   : > { %p1707_p8 = pneg %p1706_p7 }
 0x658   : > { %p1712_p12 = pnand %p1711_p11, %p1707_p8 }
 0x65a   : > { %1715 = shalt.err (!%p1712_p12)
}
 0x65b   : > { %s1758_s26 = smov 256   ;;  %s1759_s29 = smov 16  }
 0x65c   : > { %1487 = dma.vmem_to_hbm [thread:$0]  (%p1833_p5), %s2578_s28, 1024, %s2576_s10, %s2585_s25, %s1758_s26, %s1758_s26, %s1759_s29  }
 0x65d PF: > { %p1493_p13 = scmp.ge.s32.totalorder %s1750_s24, 2  ;;  %s1404_s9 = sand.u32 1, %s1738_s21  }
 0x65e   : > { %s1405_s11 = scalar_lea.sflag [#allocation3], %s1404_s9 }
 0x65f   : > { %p1490_p0 = pnand %p1493_p13, %p1837_p6 }
 0x661   : > { %p1491_p1 = pneg %p1490_p0 }
 0x663   : > { %1733 = dma.done.wait (%p1491_p1), %s1405_s11, 1024  }
 0x664   : > { %1735 = vsyncadd (%p1491_p1), %s1405_s11, 4294966272  ;;  %p16_p2 = scmp.ge.s32.totalorder %s1820_s27, 4   ;;  %s2681_s21 = smov %s1742_s22 }
 0x665   : > { %s2682_s22 = smov %s1746_s23  ;;  %s2683_s23 = smov %s1831_s30 }
 0x666   : > { %s2684_s24 = smov %s1820_s27  ;;  %18 = sbr.rel (!%p16_p2) target bundleno = 3 (0x3), region = 79 }
 0x66b   :  { %1410 = vsyncpa [#allocation3], 1 }
 0x66c   :  { %1412 = vsyncpa [#allocation3 + $0x1], 1 }

</bundles_post_ra>
